<compile_context>
chip_gen: v7x
topology: tpu7x:2x2x1
jax: 0.10.0
libtpu: 0.0.40
codegen_flags: <defaults>
</compile_context>

<pallas_src>
import functools
import math

import jax
import jax.numpy as jnp
from jax import lax
from jax.experimental import pallas as pl
from jax.experimental.pallas import tpu as pltpu


def _mha_kernel(q_ref, k_ref, v_ref, mask_ref,
                wq_ref, bq_ref, wk_ref, bk_ref, wv_ref, bv_ref,
                wo_ref, bo_ref,
                out_ref, attn_ref,
                *, num_heads, k_dim, v_dim, scale):
    # q_ref: (1, tq, D), k_ref/v_ref: (1, Lk, D), mask_ref: (1, tq, Lk)
    xq = q_ref[0]                    # (tq, D) -- also the residual
    xk = k_ref[0]                    # (Lk, D)
    xv = v_ref[0]                    # (Lk, D)

    # Fused input projections: big MXU matmuls at input dtype, f32 accumulate.
    q_all = jnp.dot(xq, wq_ref[...], preferred_element_type=jnp.float32) + bq_ref[...]
    k_all = jnp.dot(xk, wk_ref[...], preferred_element_type=jnp.float32) + bk_ref[...]
    v_all = jnp.dot(xv, wv_ref[...], preferred_element_type=jnp.float32) + bv_ref[...]

    # Hoisted: mask predicate and scale, loaded/built once per tile.
    masked = mask_ref[0] == 0        # (tq, Lk) bool
    inv_scale = jnp.float32(1.0 / scale)
    neg_big = jnp.float32(-1e9)

    acc = None                       # fc_o accumulator over heads, (tq, D) f32
    for h in range(num_heads):       # static unroll; heads are few
        qh = q_all[:, h * k_dim:(h + 1) * k_dim]          # (tq, Dk)
        kh = k_all[:, h * k_dim:(h + 1) * k_dim]          # (Lk, Dk)
        vh = v_all[:, h * v_dim:(h + 1) * v_dim]          # (Lk, Dv)

        # scores = Qh @ Kh^T (contract last dims; no explicit transpose needed)
        scores = lax.dot_general(
            qh, kh, dimension_numbers=(((1,), (1,)), ((), ())),
            preferred_element_type=jnp.float32) * inv_scale        # (tq, Lk)
        scores = jnp.where(masked, neg_big, scores)

        # numerically-stable softmax (f32)
        m = jnp.max(scores, axis=-1, keepdims=True)
        e = jnp.exp(scores - m)
        attn = e / jnp.sum(e, axis=-1, keepdims=True)
        # TODO(synk): training-mode dropout on `attn` not implemented (eval).

        attn_ref[0, h, :, :] = attn.astype(attn_ref.dtype)

        # ctx_h = attn @ Vh ; partial fc_o = ctx_h @ Wo[h*Dv:(h+1)*Dv, :]
        ctx = jnp.dot(attn.astype(xv.dtype), vh.astype(xv.dtype),
                      preferred_element_type=jnp.float32)          # (tq, Dv)
        part = jnp.dot(ctx.astype(xv.dtype),
                       wo_ref[h * v_dim:(h + 1) * v_dim, :],
                       preferred_element_type=jnp.float32)         # (tq, D)
        acc = part if acc is None else acc + part

    # fc_o bias + (dropout==identity) + residual add
    out = acc + bo_ref[...] + xq.astype(jnp.float32)
    out_ref[0, :, :] = out.astype(out_ref.dtype)


def multi_head_attention(xq, xk, xv, src_mask,
                         wq, bq, wk, bk, wv, bv, wo, bo,
                         *, num_heads, k_dim, v_dim, model_dim=None,
                         max_tq=256):
    """xq/xk/xv: (B, L, D); src_mask: (B, Lq, Lk) (1 = attend, 0 = masked).

    Weights are stored transposed vs. PyTorch (in_features, out_features) so
    the kernel computes x @ W + b directly on the MXU.
    Returns (out (B, Lq, D), attn (B, H, Lq, Lk)).
    """
    B, Lq, D = xq.shape
    Lk = xk.shape[1]
    assert xv.shape[1] == Lk, "len_k must equal len_v"
    model_dim = D if model_dim is None else model_dim
    # The module's fc_o / residual require concat(heads) width == model_dim.
    assert num_heads * v_dim == model_dim

    scale = math.sqrt(model_dim // num_heads)

    # Row tile over the query sequence: full Lq for small seqs, otherwise the
    # largest aligned divisor <= max_tq (tunable per TPU generation).
    if Lq <= max_tq:
        tq = Lq
    else:
        tq = Lq
        for cand in (512, 256, 128, 64, 32, 16, 8):
            if cand <= max_tq and Lq % cand == 0:
                tq = cand
                break

    grid = (B, Lq // tq)
    hk = num_heads * k_dim
    hv = num_heads * v_dim

    mask_i32 = src_mask.astype(jnp.int32)
    bq2 = bq.reshape(1, hk)
    bk2 = bk.reshape(1, hk)
    bv2 = bv.reshape(1, hv)
    bo2 = bo.reshape(1, D)

    kernel = functools.partial(_mha_kernel, num_heads=num_heads,
                               k_dim=k_dim, v_dim=v_dim, scale=scale)

    # Advisory cost estimate for XLA scheduling around the custom call.
    flops = (2 * B * Lq * D * hk + 2 * B * Lk * D * hk + 2 * B * Lk * D * hv
             + 2 * B * num_heads * Lq * Lk * k_dim
             + 2 * B * num_heads * Lq * Lk * v_dim
             + 2 * B * Lq * hv * D)
    operands = (xq, xk, xv, mask_i32, wq, bq2, wk, bk2, wv, bv2, wo, bo2)
    bytes_accessed = sum(int(a.size) * a.dtype.itemsize for a in operands)
    bytes_accessed += B * Lq * D * xq.dtype.itemsize                 # out
    bytes_accessed += B * num_heads * Lq * Lk * xq.dtype.itemsize    # attn
    cost = pl.CostEstimate(flops=int(flops),
                           transcendentals=int(B * num_heads * Lq * Lk),
                           bytes_accessed=int(bytes_accessed))

    out, attn = pl.pallas_call(
        kernel,
        out_shape=(jax.ShapeDtypeStruct((B, Lq, D), xq.dtype),
                   jax.ShapeDtypeStruct((B, num_heads, Lq, Lk), xq.dtype)),
        grid_spec=pltpu.PrefetchScalarGridSpec(
            num_scalar_prefetch=0,
            grid=grid,
            in_specs=[
                pl.BlockSpec((1, tq, D), lambda b, i: (b, i, 0)),    # q tile
                pl.BlockSpec((1, Lk, D), lambda b, i: (b, 0, 0)),    # k (full)
                pl.BlockSpec((1, Lk, D), lambda b, i: (b, 0, 0)),    # v (full)
                pl.BlockSpec((1, tq, Lk), lambda b, i: (b, i, 0)),   # mask tile
                pl.BlockSpec((D, hk), lambda b, i: (0, 0)),          # Wq
                pl.BlockSpec((1, hk), lambda b, i: (0, 0)),          # bq
                pl.BlockSpec((D, hk), lambda b, i: (0, 0)),          # Wk
                pl.BlockSpec((1, hk), lambda b, i: (0, 0)),          # bk
                pl.BlockSpec((D, hv), lambda b, i: (0, 0)),          # Wv
                pl.BlockSpec((1, hv), lambda b, i: (0, 0)),          # bv
                pl.BlockSpec((hv, D), lambda b, i: (0, 0)),          # Wo
                pl.BlockSpec((1, D), lambda b, i: (0, 0)),           # bo
            ],
            out_specs=[
                pl.BlockSpec((1, tq, D), lambda b, i: (b, i, 0)),
                pl.BlockSpec((1, num_heads, tq, Lk), lambda b, i: (b, 0, i, 0)),
            ],
        ),
        compiler_params=pltpu.CompilerParams(
            dimension_semantics=("parallel", "parallel")),
        cost_estimate=cost,
    )(*operands)

    return out, attn


def _reference(xq, xk, xv, src_mask, wq, bq, wk, bk, wv, bv, wo, bo,
               *, num_heads, k_dim, v_dim, scale):
    B, Lq, D = xq.shape
    Lk = xk.shape[1]
    q = (xq @ wq + bq).reshape(B, Lq, num_heads, k_dim).transpose(0, 2, 1, 3)
    k = (xk @ wk + bk).reshape(B, Lk, num_heads, k_dim).transpose(0, 2, 1, 3)
    v = (xv @ wv + bv).reshape(B, Lk, num_heads, v_dim).transpose(0, 2, 1, 3)
    scores = jnp.einsum("bhqd,bhkd->bhqk", q, k) / scale
    scores = jnp.where(src_mask[:, None, :, :] == 0, -1e9, scores)
    attn = jax.nn.softmax(scores, axis=-1)
    ctx = jnp.einsum("bhqk,bhkd->bhqd", attn, v)
    ctx = ctx.transpose(0, 2, 1, 3).reshape(B, Lq, num_heads * v_dim)
    out = ctx @ wo + bo + xq
    return out, attn


if __name__ == "__main__":
    batch, seq, model_dim = 2, 8, 32
    num_heads, k_dim, v_dim = 4, 8, 8        # num_heads * v_dim == model_dim

    key = jax.random.PRNGKey(0)
    ks = jax.random.split(key, 11)
    xq = jax.random.normal(ks[0], (batch, seq, model_dim), dtype=jnp.float32)
    xk = jax.random.normal(ks[1], (batch, seq, model_dim), dtype=jnp.float32)
    xv = jax.random.normal(ks[2], (batch, seq, model_dim), dtype=jnp.float32)

    # causal src_mask (B, Lq, Lk): 1 = attend, 0 = masked (every row has >=1 valid key)
    causal = (jnp.arange(seq)[:, None] >= jnp.arange(seq)[None, :]).astype(jnp.int32)
    src_mask = jnp.tile(causal[None, :, :], (batch, 1, 1))

    sc = 0.05
    # nn.Linear weights stored transposed: (in_features, out_features)
    wq = jax.random.normal(ks[3], (model_dim, num_heads * k_dim), jnp.float32) * sc
    bq = jax.random.normal(ks[4], (num_heads * k_dim,), jnp.float32) * sc
    wk = jax.random.normal(ks[5], (model_dim, num_heads * k_dim), jnp.float32) * sc
    bk = jax.random.normal(ks[6], (num_heads * k_dim,), jnp.float32) * sc
    wv = jax.random.normal(ks[7], (model_dim, num_heads * v_dim), jnp.float32) * sc
    bv = jax.random.normal(ks[8], (num_heads * v_dim,), jnp.float32) * sc
    wo = jax.random.normal(ks[9], (num_heads * v_dim, model_dim), jnp.float32) * sc
    bo = jax.random.normal(ks[10], (model_dim,), jnp.float32) * sc

    out, attn = multi_head_attention(
        xq, xk, xv, src_mask, wq, bq, wk, bk, wv, bv, wo, bo,
        num_heads=num_heads, k_dim=k_dim, v_dim=v_dim, model_dim=model_dim)
    out, attn = jax.block_until_ready((out, attn))

    scale = math.sqrt(model_dim // num_heads)
    ref_out, ref_attn = _reference(
        xq, xk, xv, src_mask, wq, bq, wk, bk, wv, bv, wo, bo,
        num_heads=num_heads, k_dim=k_dim, v_dim=v_dim, scale=scale)

    assert out.shape == (batch, seq, model_dim) and out.dtype == xq.dtype
    assert attn.shape == (batch, num_heads, seq, seq)
    assert jnp.allclose(out, ref_out, atol=1e-4, rtol=1e-4), "output mismatch vs reference"
    assert jnp.allclose(attn, ref_attn, atol=1e-5, rtol=1e-4), "attention mismatch vs reference"

    print("KERNEL_OK")
</pallas_src>

<mosaic_0001>
module attributes {stable_mosaic.version = 11 : i64} {
  func.func @_mha_kernel(%arg0: i32, %arg1: i32, %arg2: memref<1x8x32xf32, #tpu.memory_space<vmem>>, %arg3: memref<1x8x32xf32, #tpu.memory_space<vmem>>, %arg4: memref<1x8x32xf32, #tpu.memory_space<vmem>>, %arg5: memref<1x8x8xi32, #tpu.memory_space<vmem>>, %arg6: memref<32x32xf32, #tpu.memory_space<vmem>>, %arg7: memref<1x32xf32, #tpu.memory_space<vmem>>, %arg8: memref<32x32xf32, #tpu.memory_space<vmem>>, %arg9: memref<1x32xf32, #tpu.memory_space<vmem>>, %arg10: memref<32x32xf32, #tpu.memory_space<vmem>>, %arg11: memref<1x32xf32, #tpu.memory_space<vmem>>, %arg12: memref<32x32xf32, #tpu.memory_space<vmem>>, %arg13: memref<1x32xf32, #tpu.memory_space<vmem>>, %arg14: memref<1x8x32xf32, #tpu.memory_space<vmem>>, %arg15: memref<1x4x8x8xf32, #tpu.memory_space<vmem>>) attributes {dimension_semantics = [#tpu.dimension_semantics<parallel>, #tpu.dimension_semantics<parallel>], iteration_bounds = array<i64: 2, 1>, scalar_prefetch = 0 : i64, scratch_operands = 0 : i64, tpu.core_type = #tpu.core_type<tc>, window_params = [{transform_indices = @transform_0, window_bounds = array<i64: 1, 8, 32>}, {transform_indices = @transform_1, window_bounds = array<i64: 1, 8, 32>}, {transform_indices = @transform_2, window_bounds = array<i64: 1, 8, 32>}, {transform_indices = @transform_3, window_bounds = array<i64: 1, 8, 8>}, {pipeline_mode = #tpu.pipeline_mode<synchronous>, transform_indices = @transform_4, window_bounds = array<i64: 32, 32>}, {pipeline_mode = #tpu.pipeline_mode<synchronous>, transform_indices = @transform_5, window_bounds = array<i64: 1, 32>}, {pipeline_mode = #tpu.pipeline_mode<synchronous>, transform_indices = @transform_6, window_bounds = array<i64: 32, 32>}, {pipeline_mode = #tpu.pipeline_mode<synchronous>, transform_indices = @transform_7, window_bounds = array<i64: 1, 32>}, {pipeline_mode = #tpu.pipeline_mode<synchronous>, transform_indices = @transform_8, window_bounds = array<i64: 32, 32>}, {pipeline_mode = #tpu.pipeline_mode<synchronous>, transform_indices = @transform_9, window_bounds = array<i64: 1, 32>}, {pipeline_mode = #tpu.pipeline_mode<synchronous>, transform_indices = @transform_10, window_bounds = array<i64: 32, 32>}, {pipeline_mode = #tpu.pipeline_mode<synchronous>, transform_indices = @transform_11, window_bounds = array<i64: 1, 32>}, {transform_indices = @transform_12, window_bounds = array<i64: 1, 8, 32>}, {transform_indices = @transform_13, window_bounds = array<i64: 1, 4, 8, 8>}]} {
    %c0 = arith.constant 0 : index
    %c0_0 = arith.constant 0 : index
    %c0_1 = arith.constant 0 : index
    %0 = vector.load %arg2[%c0, %c0_0, %c0_1] : memref<1x8x32xf32, #tpu.memory_space<vmem>>, vector<1x8x32xf32>
    %1 = vector.shape_cast %0 : vector<1x8x32xf32> to vector<8x32xf32>
    %c0_2 = arith.constant 0 : index
    %c0_3 = arith.constant 0 : index
    %c0_4 = arith.constant 0 : index
    %2 = vector.load %arg3[%c0_2, %c0_3, %c0_4] : memref<1x8x32xf32, #tpu.memory_space<vmem>>, vector<1x8x32xf32>
    %3 = vector.shape_cast %2 : vector<1x8x32xf32> to vector<8x32xf32>
    %c0_5 = arith.constant 0 : index
    %c0_6 = arith.constant 0 : index
    %c0_7 = arith.constant 0 : index
    %4 = vector.load %arg4[%c0_5, %c0_6, %c0_7] : memref<1x8x32xf32, #tpu.memory_space<vmem>>, vector<1x8x32xf32>
    %5 = vector.shape_cast %4 : vector<1x8x32xf32> to vector<8x32xf32>
    %c0_8 = arith.constant 0 : index
    %c0_9 = arith.constant 0 : index
    %6 = vector.load %arg6[%c0_8, %c0_9] : memref<32x32xf32, #tpu.memory_space<vmem>>, vector<32x32xf32>
    %cst = arith.constant dense<0.000000e+00> : vector<8x32xf32>
    %7 = tpu.matmul %1, %6, %cst {dimension_numbers = #tpu.dot_dimension_numbers<[1], [0], [0], [1], [0, 0, 1, 1], [], []>} : vector<8x32xf32>, vector<32x32xf32>, vector<8x32xf32> -> vector<8x32xf32>
    %c0_10 = arith.constant 0 : index
    %c0_11 = arith.constant 0 : index
    %8 = vector.load %arg7[%c0_10, %c0_11] : memref<1x32xf32, #tpu.memory_space<vmem>>, vector<1x32xf32>
    %9 = vector.broadcast %8 : vector<1x32xf32> to vector<8x32xf32>
    %10 = arith.addf %7, %9 : vector<8x32xf32>
    %c0_12 = arith.constant 0 : index
    %c0_13 = arith.constant 0 : index
    %11 = vector.load %arg8[%c0_12, %c0_13] : memref<32x32xf32, #tpu.memory_space<vmem>>, vector<32x32xf32>
    %cst_14 = arith.constant dense<0.000000e+00> : vector<8x32xf32>
    %12 = tpu.matmul %3, %11, %cst_14 {dimension_numbers = #tpu.dot_dimension_numbers<[1], [0], [0], [1], [0, 0, 1, 1], [], []>} : vector<8x32xf32>, vector<32x32xf32>, vector<8x32xf32> -> vector<8x32xf32>
    %c0_15 = arith.constant 0 : index
    %c0_16 = arith.constant 0 : index
    %13 = vector.load %arg9[%c0_15, %c0_16] : memref<1x32xf32, #tpu.memory_space<vmem>>, vector<1x32xf32>
    %14 = vector.broadcast %13 : vector<1x32xf32> to vector<8x32xf32>
    %15 = arith.addf %12, %14 : vector<8x32xf32>
    %c0_17 = arith.constant 0 : index
    %c0_18 = arith.constant 0 : index
    %16 = vector.load %arg10[%c0_17, %c0_18] : memref<32x32xf32, #tpu.memory_space<vmem>>, vector<32x32xf32>
    %cst_19 = arith.constant dense<0.000000e+00> : vector<8x32xf32>
    %17 = tpu.matmul %5, %16, %cst_19 {dimension_numbers = #tpu.dot_dimension_numbers<[1], [0], [0], [1], [0, 0, 1, 1], [], []>} : vector<8x32xf32>, vector<32x32xf32>, vector<8x32xf32> -> vector<8x32xf32>
    %c0_20 = arith.constant 0 : index
    %c0_21 = arith.constant 0 : index
    %18 = vector.load %arg11[%c0_20, %c0_21] : memref<1x32xf32, #tpu.memory_space<vmem>>, vector<1x32xf32>
    %19 = vector.broadcast %18 : vector<1x32xf32> to vector<8x32xf32>
    %20 = arith.addf %17, %19 : vector<8x32xf32>
    %c0_22 = arith.constant 0 : index
    %c0_23 = arith.constant 0 : index
    %c0_24 = arith.constant 0 : index
    %21 = vector.load %arg5[%c0_22, %c0_23, %c0_24] : memref<1x8x8xi32, #tpu.memory_space<vmem>>, vector<1x8x8xi32>
    %22 = vector.shape_cast %21 : vector<1x8x8xi32> to vector<8x8xi32>
    %c0_i32 = arith.constant 0 : i32
    %23 = vector.broadcast %c0_i32 : i32 to vector<8x8xi32>
    %24 = arith.cmpi eq, %22, %23 : vector<8x8xi32>
    %25 = vector.extract_strided_slice %10 {offsets = [0, 0], sizes = [8, 8], strides = [1, 1]} : vector<8x32xf32> to vector<8x8xf32>
    %26 = vector.extract_strided_slice %15 {offsets = [0, 0], sizes = [8, 8], strides = [1, 1]} : vector<8x32xf32> to vector<8x8xf32>
    %27 = vector.extract_strided_slice %20 {offsets = [0, 0], sizes = [8, 8], strides = [1, 1]} : vector<8x32xf32> to vector<8x8xf32>
    %cst_25 = arith.constant dense<0.000000e+00> : vector<8x8xf32>
    %28 = tpu.matmul %25, %26, %cst_25 {dimension_numbers = #tpu.dot_dimension_numbers<[1], [1], [0], [0], [0, 0, 1, 0], [], []>} : vector<8x8xf32>, vector<8x8xf32>, vector<8x8xf32> -> vector<8x8xf32>
    %cst_26 = arith.constant 0.353553385 : f32
    %29 = vector.broadcast %cst_26 : f32 to vector<8x8xf32>
    %30 = arith.mulf %28, %29 : vector<8x8xf32>
    %cst_27 = arith.constant -1.000000e+09 : f32
    %31 = vector.broadcast %cst_27 : f32 to vector<8x8xf32>
    %32 = arith.select %24, %31, %30 : vector<8x8xi1>, vector<8x8xf32>
    %cst_28 = arith.constant dense<0xFF800000> : vector<8xf32>
    %33 = vector.multi_reduction <maximumf>, %32, %cst_28 [1] : vector<8x8xf32> to vector<8xf32>
    %34 = vector.shape_cast %33 : vector<8xf32> to vector<8x1xf32>
    %35 = vector.broadcast %34 : vector<8x1xf32> to vector<8x8xf32>
    %36 = arith.subf %32, %35 : vector<8x8xf32>
    %37 = math.exp %36 : vector<8x8xf32>
    %cst_29 = arith.constant dense<0.000000e+00> : vector<8xf32>
    %38 = vector.multi_reduction <add>, %37, %cst_29 [1] : vector<8x8xf32> to vector<8xf32>
    %39 = vector.shape_cast %38 : vector<8xf32> to vector<8x1xf32>
    %40 = vector.broadcast %39 : vector<8x1xf32> to vector<8x8xf32>
    %41 = arith.divf %37, %40 : vector<8x8xf32>
    %c0_30 = arith.constant 0 : index
    %c0_31 = arith.constant 0 : index
    %c0_32 = arith.constant 0 : index
    %c0_33 = arith.constant 0 : index
    %42 = vector.load %arg15[%c0_30, %c0_31, %c0_32, %c0_33] : memref<1x4x8x8xf32, #tpu.memory_space<vmem>>, vector<1x1x8x8xf32>
    %43 = vector.shape_cast %42 : vector<1x1x8x8xf32> to vector<8x8xf32>
    %44 = vector.shape_cast %41 : vector<8x8xf32> to vector<1x1x8x8xf32>
    tpu.vector_store %arg15[%c0_30, %c0_31, %c0_32, %c0_33], %44 {strides = array<i32>} : memref<1x4x8x8xf32, #tpu.memory_space<vmem>>, vector<1x1x8x8xf32>,
    %cst_34 = arith.constant dense<0.000000e+00> : vector<8x8xf32>
    %45 = tpu.matmul %41, %27, %cst_34 {dimension_numbers = #tpu.dot_dimension_numbers<[1], [0], [0], [1], [0, 0, 1, 1], [], []>} : vector<8x8xf32>, vector<8x8xf32>, vector<8x8xf32> -> vector<8x8xf32>
    %c0_35 = arith.constant 0 : index
    %c0_36 = arith.constant 0 : index
    %46 = vector.load %arg12[%c0_35, %c0_36] : memref<32x32xf32, #tpu.memory_space<vmem>>, vector<8x32xf32>
    %cst_37 = arith.constant dense<0.000000e+00> : vector<8x32xf32>
    %47 = tpu.matmul %45, %46, %cst_37 {dimension_numbers = #tpu.dot_dimension_numbers<[1], [0], [0], [1], [0, 0, 1, 1], [], []>} : vector<8x8xf32>, vector<8x32xf32>, vector<8x32xf32> -> vector<8x32xf32>
    %48 = vector.extract_strided_slice %10 {offsets = [0, 8], sizes = [8, 8], strides = [1, 1]} : vector<8x32xf32> to vector<8x8xf32>
    %49 = vector.extract_strided_slice %15 {offsets = [0, 8], sizes = [8, 8], strides = [1, 1]} : vector<8x32xf32> to vector<8x8xf32>
    %50 = vector.extract_strided_slice %20 {offsets = [0, 8], sizes = [8, 8], strides = [1, 1]} : vector<8x32xf32> to vector<8x8xf32>
    %cst_38 = arith.constant dense<0.000000e+00> : vector<8x8xf32>
    %51 = tpu.matmul %48, %49, %cst_38 {dimension_numbers = #tpu.dot_dimension_numbers<[1], [1], [0], [0], [0, 0, 1, 0], [], []>} : vector<8x8xf32>, vector<8x8xf32>, vector<8x8xf32> -> vector<8x8xf32>
    %cst_39 = arith.constant 0.353553385 : f32
    %52 = vector.broadcast %cst_39 : f32 to vector<8x8xf32>
    %53 = arith.mulf %51, %52 : vector<8x8xf32>
    %cst_40 = arith.constant -1.000000e+09 : f32
    %54 = vector.broadcast %cst_40 : f32 to vector<8x8xf32>
    %55 = arith.select %24, %54, %53 : vector<8x8xi1>, vector<8x8xf32>
    %cst_41 = arith.constant dense<0xFF800000> : vector<8xf32>
    %56 = vector.multi_reduction <maximumf>, %55, %cst_41 [1] : vector<8x8xf32> to vector<8xf32>
    %57 = vector.shape_cast %56 : vector<8xf32> to vector<8x1xf32>
    %58 = vector.broadcast %57 : vector<8x1xf32> to vector<8x8xf32>
    %59 = arith.subf %55, %58 : vector<8x8xf32>
    %60 = math.exp %59 : vector<8x8xf32>
    %cst_42 = arith.constant dense<0.000000e+00> : vector<8xf32>
    %61 = vector.multi_reduction <add>, %60, %cst_42 [1] : vector<8x8xf32> to vector<8xf32>
    %62 = vector.shape_cast %61 : vector<8xf32> to vector<8x1xf32>
    %63 = vector.broadcast %62 : vector<8x1xf32> to vector<8x8xf32>
    %64 = arith.divf %60, %63 : vector<8x8xf32>
    %c0_43 = arith.constant 0 : index
    %c1 = arith.constant 1 : index
    %c0_44 = arith.constant 0 : index
    %c0_45 = arith.constant 0 : index
    %65 = vector.load %arg15[%c0_43, %c1, %c0_44, %c0_45] : memref<1x4x8x8xf32, #tpu.memory_space<vmem>>, vector<1x1x8x8xf32>
    %66 = vector.shape_cast %65 : vector<1x1x8x8xf32> to vector<8x8xf32>
    %67 = vector.shape_cast %64 : vector<8x8xf32> to vector<1x1x8x8xf32>
    tpu.vector_store %arg15[%c0_43, %c1, %c0_44, %c0_45], %67 {strides = array<i32>} : memref<1x4x8x8xf32, #tpu.memory_space<vmem>>, vector<1x1x8x8xf32>,
    %cst_46 = arith.constant dense<0.000000e+00> : vector<8x8xf32>
    %68 = tpu.matmul %64, %50, %cst_46 {dimension_numbers = #tpu.dot_dimension_numbers<[1], [0], [0], [1], [0, 0, 1, 1], [], []>} : vector<8x8xf32>, vector<8x8xf32>, vector<8x8xf32> -> vector<8x8xf32>
    %c8 = arith.constant 8 : index
    %c0_47 = arith.constant 0 : index
    %69 = vector.load %arg12[%c8, %c0_47] : memref<32x32xf32, #tpu.memory_space<vmem>>, vector<8x32xf32>
    %cst_48 = arith.constant dense<0.000000e+00> : vector<8x32xf32>
    %70 = tpu.matmul %68, %69, %cst_48 {dimension_numbers = #tpu.dot_dimension_numbers<[1], [0], [0], [1], [0, 0, 1, 1], [], []>} : vector<8x8xf32>, vector<8x32xf32>, vector<8x32xf32> -> vector<8x32xf32>
    %71 = arith.addf %47, %70 : vector<8x32xf32>
    %72 = vector.extract_strided_slice %10 {offsets = [0, 16], sizes = [8, 8], strides = [1, 1]} : vector<8x32xf32> to vector<8x8xf32>
    %73 = vector.extract_strided_slice %15 {offsets = [0, 16], sizes = [8, 8], strides = [1, 1]} : vector<8x32xf32> to vector<8x8xf32>
    %74 = vector.extract_strided_slice %20 {offsets = [0, 16], sizes = [8, 8], strides = [1, 1]} : vector<8x32xf32> to vector<8x8xf32>
    %cst_49 = arith.constant dense<0.000000e+00> : vector<8x8xf32>
    %75 = tpu.matmul %72, %73, %cst_49 {dimension_numbers = #tpu.dot_dimension_numbers<[1], [1], [0], [0], [0, 0, 1, 0], [], []>} : vector<8x8xf32>, vector<8x8xf32>, vector<8x8xf32> -> vector<8x8xf32>
    %cst_50 = arith.constant 0.353553385 : f32
    %76 = vector.broadcast %cst_50 : f32 to vector<8x8xf32>
    %77 = arith.mulf %75, %76 : vector<8x8xf32>
    %cst_51 = arith.constant -1.000000e+09 : f32
    %78 = vector.broadcast %cst_51 : f32 to vector<8x8xf32>
    %79 = arith.select %24, %78, %77 : vector<8x8xi1>, vector<8x8xf32>
    %cst_52 = arith.constant dense<0xFF800000> : vector<8xf32>
    %80 = vector.multi_reduction <maximumf>, %79, %cst_52 [1] : vector<8x8xf32> to vector<8xf32>
    %81 = vector.shape_cast %80 : vector<8xf32> to vector<8x1xf32>
    %82 = vector.broadcast %81 : vector<8x1xf32> to vector<8x8xf32>
    %83 = arith.subf %79, %82 : vector<8x8xf32>
    %84 = math.exp %83 : vector<8x8xf32>
    %cst_53 = arith.constant dense<0.000000e+00> : vector<8xf32>
    %85 = vector.multi_reduction <add>, %84, %cst_53 [1] : vector<8x8xf32> to vector<8xf32>
    %86 = vector.shape_cast %85 : vector<8xf32> to vector<8x1xf32>
    %87 = vector.broadcast %86 : vector<8x1xf32> to vector<8x8xf32>
    %88 = arith.divf %84, %87 : vector<8x8xf32>
    %c0_54 = arith.constant 0 : index
    %c2 = arith.constant 2 : index
    %c0_55 = arith.constant 0 : index
    %c0_56 = arith.constant 0 : index
    %89 = vector.load %arg15[%c0_54, %c2, %c0_55, %c0_56] : memref<1x4x8x8xf32, #tpu.memory_space<vmem>>, vector<1x1x8x8xf32>
    %90 = vector.shape_cast %89 : vector<1x1x8x8xf32> to vector<8x8xf32>
    %91 = vector.shape_cast %88 : vector<8x8xf32> to vector<1x1x8x8xf32>
    tpu.vector_store %arg15[%c0_54, %c2, %c0_55, %c0_56], %91 {strides = array<i32>} : memref<1x4x8x8xf32, #tpu.memory_space<vmem>>, vector<1x1x8x8xf32>,
    %cst_57 = arith.constant dense<0.000000e+00> : vector<8x8xf32>
    %92 = tpu.matmul %88, %74, %cst_57 {dimension_numbers = #tpu.dot_dimension_numbers<[1], [0], [0], [1], [0, 0, 1, 1], [], []>} : vector<8x8xf32>, vector<8x8xf32>, vector<8x8xf32> -> vector<8x8xf32>
    %c16 = arith.constant 16 : index
    %c0_58 = arith.constant 0 : index
    %93 = vector.load %arg12[%c16, %c0_58] : memref<32x32xf32, #tpu.memory_space<vmem>>, vector<8x32xf32>
    %cst_59 = arith.constant dense<0.000000e+00> : vector<8x32xf32>
    %94 = tpu.matmul %92, %93, %cst_59 {dimension_numbers = #tpu.dot_dimension_numbers<[1], [0], [0], [1], [0, 0, 1, 1], [], []>} : vector<8x8xf32>, vector<8x32xf32>, vector<8x32xf32> -> vector<8x32xf32>
    %95 = arith.addf %71, %94 : vector<8x32xf32>
    %96 = vector.extract_strided_slice %10 {offsets = [0, 24], sizes = [8, 8], strides = [1, 1]} : vector<8x32xf32> to vector<8x8xf32>
    %97 = vector.extract_strided_slice %15 {offsets = [0, 24], sizes = [8, 8], strides = [1, 1]} : vector<8x32xf32> to vector<8x8xf32>
    %98 = vector.extract_strided_slice %20 {offsets = [0, 24], sizes = [8, 8], strides = [1, 1]} : vector<8x32xf32> to vector<8x8xf32>
    %cst_60 = arith.constant dense<0.000000e+00> : vector<8x8xf32>
    %99 = tpu.matmul %96, %97, %cst_60 {dimension_numbers = #tpu.dot_dimension_numbers<[1], [1], [0], [0], [0, 0, 1, 0], [], []>} : vector<8x8xf32>, vector<8x8xf32>, vector<8x8xf32> -> vector<8x8xf32>
    %cst_61 = arith.constant 0.353553385 : f32
    %100 = vector.broadcast %cst_61 : f32 to vector<8x8xf32>
    %101 = arith.mulf %99, %100 : vector<8x8xf32>
    %cst_62 = arith.constant -1.000000e+09 : f32
    %102 = vector.broadcast %cst_62 : f32 to vector<8x8xf32>
    %103 = arith.select %24, %102, %101 : vector<8x8xi1>, vector<8x8xf32>
    %cst_63 = arith.constant dense<0xFF800000> : vector<8xf32>
    %104 = vector.multi_reduction <maximumf>, %103, %cst_63 [1] : vector<8x8xf32> to vector<8xf32>
    %105 = vector.shape_cast %104 : vector<8xf32> to vector<8x1xf32>
    %106 = vector.broadcast %105 : vector<8x1xf32> to vector<8x8xf32>
    %107 = arith.subf %103, %106 : vector<8x8xf32>
    %108 = math.exp %107 : vector<8x8xf32>
    %cst_64 = arith.constant dense<0.000000e+00> : vector<8xf32>
    %109 = vector.multi_reduction <add>, %108, %cst_64 [1] : vector<8x8xf32> to vector<8xf32>
    %110 = vector.shape_cast %109 : vector<8xf32> to vector<8x1xf32>
    %111 = vector.broadcast %110 : vector<8x1xf32> to vector<8x8xf32>
    %112 = arith.divf %108, %111 : vector<8x8xf32>
    %c0_65 = arith.constant 0 : index
    %c3 = arith.constant 3 : index
    %c0_66 = arith.constant 0 : index
    %c0_67 = arith.constant 0 : index
    %113 = vector.load %arg15[%c0_65, %c3, %c0_66, %c0_67] : memref<1x4x8x8xf32, #tpu.memory_space<vmem>>, vector<1x1x8x8xf32>
    %114 = vector.shape_cast %113 : vector<1x1x8x8xf32> to vector<8x8xf32>
    %115 = vector.shape_cast %112 : vector<8x8xf32> to vector<1x1x8x8xf32>
    tpu.vector_store %arg15[%c0_65, %c3, %c0_66, %c0_67], %115 {strides = array<i32>} : memref<1x4x8x8xf32, #tpu.memory_space<vmem>>, vector<1x1x8x8xf32>,
    %cst_68 = arith.constant dense<0.000000e+00> : vector<8x8xf32>
    %116 = tpu.matmul %112, %98, %cst_68 {dimension_numbers = #tpu.dot_dimension_numbers<[1], [0], [0], [1], [0, 0, 1, 1], [], []>} : vector<8x8xf32>, vector<8x8xf32>, vector<8x8xf32> -> vector<8x8xf32>
    %c24 = arith.constant 24 : index
    %c0_69 = arith.constant 0 : index
    %117 = vector.load %arg12[%c24, %c0_69] : memref<32x32xf32, #tpu.memory_space<vmem>>, vector<8x32xf32>
    %cst_70 = arith.constant dense<0.000000e+00> : vector<8x32xf32>
    %118 = tpu.matmul %116, %117, %cst_70 {dimension_numbers = #tpu.dot_dimension_numbers<[1], [0], [0], [1], [0, 0, 1, 1], [], []>} : vector<8x8xf32>, vector<8x32xf32>, vector<8x32xf32> -> vector<8x32xf32>
    %119 = arith.addf %95, %118 : vector<8x32xf32>
    %c0_71 = arith.constant 0 : index
    %c0_72 = arith.constant 0 : index
    %120 = vector.load %arg13[%c0_71, %c0_72] : memref<1x32xf32, #tpu.memory_space<vmem>>, vector<1x32xf32>
    %121 = vector.broadcast %120 : vector<1x32xf32> to vector<8x32xf32>
    %122 = arith.addf %119, %121 : vector<8x32xf32>
    %123 = arith.addf %122, %1 : vector<8x32xf32>
    %c0_73 = arith.constant 0 : index
    %c0_74 = arith.constant 0 : index
    %c0_75 = arith.constant 0 : index
    %124 = vector.load %arg14[%c0_73, %c0_74, %c0_75] : memref<1x8x32xf32, #tpu.memory_space<vmem>>, vector<1x8x32xf32>
    %125 = vector.shape_cast %124 : vector<1x8x32xf32> to vector<8x32xf32>
    %126 = vector.shape_cast %123 : vector<8x32xf32> to vector<1x8x32xf32>
    tpu.vector_store %arg14[%c0_73, %c0_74, %c0_75], %126 {strides = array<i32>} : memref<1x8x32xf32, #tpu.memory_space<vmem>>, vector<1x8x32xf32>,
    return
  }
  func.func @transform_0(%arg0: i32, %arg1: i32) -> (i32, i32, i32) {
    %c0_i32 = arith.constant 0 : i32
    %c0_i32_0 = arith.constant 0 : i32
    return %arg0, %arg1, %c0_i32 : i32, i32, i32
  }
  func.func @transform_1(%arg0: i32, %arg1: i32) -> (i32, i32, i32) {
    %c0_i32 = arith.constant 0 : i32
    %c0_i32_0 = arith.constant 0 : i32
    %c0_i32_1 = arith.constant 0 : i32
    return %arg0, %c0_i32, %c0_i32_0 : i32, i32, i32
  }
  func.func @transform_2(%arg0: i32, %arg1: i32) -> (i32, i32, i32) {
    %c0_i32 = arith.constant 0 : i32
    %c0_i32_0 = arith.constant 0 : i32
    %c0_i32_1 = arith.constant 0 : i32
    return %arg0, %c0_i32, %c0_i32_0 : i32, i32, i32
  }
  func.func @transform_3(%arg0: i32, %arg1: i32) -> (i32, i32, i32) {
    %c0_i32 = arith.constant 0 : i32
    %c0_i32_0 = arith.constant 0 : i32
    return %arg0, %arg1, %c0_i32 : i32, i32, i32
  }
  func.func @transform_4(%arg0: i32, %arg1: i32) -> (i32, i32) {
    %c0_i32 = arith.constant 0 : i32
    %c0_i32_0 = arith.constant 0 : i32
    %c0_i32_1 = arith.constant 0 : i32
    return %c0_i32, %c0_i32_0 : i32, i32
  }
  func.func @transform_5(%arg0: i32, %arg1: i32) -> (i32, i32) {
    %c0_i32 = arith.constant 0 : i32
    %c0_i32_0 = arith.constant 0 : i32
    %c0_i32_1 = arith.constant 0 : i32
    return %c0_i32, %c0_i32_0 : i32, i32
  }
  func.func @transform_6(%arg0: i32, %arg1: i32) -> (i32, i32) {
    %c0_i32 = arith.constant 0 : i32
    %c0_i32_0 = arith.constant 0 : i32
    %c0_i32_1 = arith.constant 0 : i32
    return %c0_i32, %c0_i32_0 : i32, i32
  }
  func.func @transform_7(%arg0: i32, %arg1: i32) -> (i32, i32) {
    %c0_i32 = arith.constant 0 : i32
    %c0_i32_0 = arith.constant 0 : i32
    %c0_i32_1 = arith.constant 0 : i32
    return %c0_i32, %c0_i32_0 : i32, i32
  }
  func.func @transform_8(%arg0: i32, %arg1: i32) -> (i32, i32) {
    %c0_i32 = arith.constant 0 : i32
    %c0_i32_0 = arith.constant 0 : i32
    %c0_i32_1 = arith.constant 0 : i32
    return %c0_i32, %c0_i32_0 : i32, i32
  }
  func.func @transform_9(%arg0: i32, %arg1: i32) -> (i32, i32) {
    %c0_i32 = arith.constant 0 : i32
    %c0_i32_0 = arith.constant 0 : i32
    %c0_i32_1 = arith.constant 0 : i32
    return %c0_i32, %c0_i32_0 : i32, i32
  }
  func.func @transform_10(%arg0: i32, %arg1: i32) -> (i32, i32) {
    %c0_i32 = arith.constant 0 : i32
    %c0_i32_0 = arith.constant 0 : i32
    %c0_i32_1 = arith.constant 0 : i32
    return %c0_i32, %c0_i32_0 : i32, i32
  }
  func.func @transform_11(%arg0: i32, %arg1: i32) -> (i32, i32) {
    %c0_i32 = arith.constant 0 : i32
    %c0_i32_0 = arith.constant 0 : i32
    %c0_i32_1 = arith.constant 0 : i32
    return %c0_i32, %c0_i32_0 : i32, i32
  }
  func.func @transform_12(%arg0: i32, %arg1: i32) -> (i32, i32, i32) {
    %c0_i32 = arith.constant 0 : i32
    %c0_i32_0 = arith.constant 0 : i32
    return %arg0, %arg1, %c0_i32 : i32, i32, i32
  }
  func.func @transform_13(%arg0: i32, %arg1: i32) -> (i32, i32, i32, i32) {
    %c0_i32 = arith.constant 0 : i32
    %c0_i32_0 = arith.constant 0 : i32
    %c0_i32_1 = arith.constant 0 : i32
    return %arg0, %c0_i32, %arg1, %c0_i32_0 : i32, i32, i32, i32
  }
}

</mosaic_0001>

<bundles_post_ra>
// kernel: tpu_custom_call.1
= control target key start
LH: loop header
LB: loop body
LE: loop exit
PB: predicated region body
PF: predicated region fallthrough
CT: control target
= control target key end

     0   :  { %s3466_s0 = inlined_call_operand.hbm [shape: f32[2,8,32], index: 0, kind: input, shape index: {}]   ;;  %s3467_s1 = inlined_call_operand.hbm [shape: f32[2,8,32], index: 1, kind: input, shape index: {}]   ;;  %s3468_s2 = inlined_call_operand.hbm [shape: f32[2,8,32], index: 2, kind: input, shape index: {}]   ;;  %s3469_s3 = inlined_call_operand.hbm [shape: s32[2,8,8], index: 3, kind: input, shape index: {}]   ;;  %s3470_s4 = inlined_call_operand.hbm [shape: f32[32,32], index: 4, kind: input, shape index: {}]   ;;  %s3471_s5 = inlined_call_operand.vmem [shape: f32[1,32], index: 5, kind: input, shape index: {}]   ;;  %s3472_s6 = inlined_call_operand.hbm [shape: f32[32,32], index: 6, kind: input, shape index: {}]   ;;  %s3473_s7 = inlined_call_operand.vmem [shape: f32[1,32], index: 7, kind: input, shape index: {}]   ;;  %s3474_s8 = inlined_call_operand.hbm [shape: f32[32,32], index: 8, kind: input, shape index: {}]   ;;  %s3475_s9 = inlined_call_operand.vmem [shape: f32[1,32], index: 9, kind: input, shape index: {}]   ;;  %s3476_s10 = inlined_call_operand.vmem [shape: f32[32,32], index: 10, kind: input, shape index: {}]   ;;  %s3477_s11 = inlined_call_operand.vmem [shape: f32[1,32], index: 11, kind: input, shape index: {}]   ;;  %s3478_s12 = inlined_call_operand.hbm [shape: f32[2,8,32], index: 12, kind: output, shape index: {0}]   ;;  %s3479_s13 = inlined_call_operand.hbm [shape: f32[2,4,8,8], index: 13, kind: output, shape index: {1}]  }
   0x1   :  { %3503 = sst [smem:[#allocation31_spill]] %s3466_s0 }
   0x2   :  { %3504 = sst [smem:[#allocation32_spill]] %s3467_s1 }
   0x3   :  { %3505 = sst [smem:[#allocation33_spill]] %s3470_s4 }
   0x4   :  { %3506 = sst [smem:[#allocation34_spill]] %s3472_s6 }
   0x5   :  { %3507 = sst [smem:[#allocation35_spill]] %s3475_s9 }
   0x6   :  { %3508 = sst [smem:[#allocation36_spill]] %s3476_s10 }
   0x7   :  { %3509 = sst [smem:[#allocation37_spill]] %s3477_s11 }
   0x8   :  { %3510 = sst [smem:[#allocation38_spill]] %s3478_s12 }
   0x9   :  { %3511 = sst [smem:[#allocation39_spill]] %s3479_s13 }
   0xa   :  { %19 = vsyncpa [#allocation3], 0 }
   0xb   :  { %21 = vsyncpa [#allocation3 + $0x1], 0 }
   0xc   :  { %22 = vsyncpa [#allocation6], 0 }
   0xd   :  { %24 = vsyncpa [#allocation6 + $0x1], 0 }
   0xe   :  { %25 = vsyncpa [#allocation9], 0 }
   0xf   :  { %27 = vsyncpa [#allocation9 + $0x1], 0 }
  0x10   :  { %28 = vsyncpa [#allocation12], 0 }
  0x11   :  { %29 = vsyncpa [#allocation4], 0 }
  0x12   :  { %31 = vsyncpa [#allocation4 + $0x1], 0 }
  0x13   :  { %32 = vsyncpa [#allocation16], 0 }
  0x14   :  { %34 = vsyncpa [#allocation16 + $0x1], 0  ;;  %s2897_s25 = smov 0   ;;  %s2899_s26 = smov 0  }
  0x15   :  { %s2901_s27 = smov 0   ;;  %s2903_s28 = smov 0  }
  0x16   :  { %s2905_s29 = smov 0   ;;  %s2907_s30 = smov 0  }
  0x17 LB: > { %3512 = sst [smem:[#allocation24_spill]] %s2786_s25  ;;  %s2928_s14 = sadd.s32 4294967295, %s2806_s30   ;;  %s2806_s30 = sphi %s2907_s30, %s40_s30   ;;  %s2802_s29 = sphi %s2905_s29, %s3562_s29   ;;  %s2798_s28 = sphi %s2903_s28, %s3561_s28   ;;  %s2794_s27 = sphi %s2901_s27, %s3565_s27   ;;  %s2790_s26 = sphi %s2899_s26, %s3564_s26   ;;  %s2786_s25 = sphi %s2897_s25, %s3563_s25  }
  0x18   : > { %3513 = sst [smem:[#allocation25_spill]] %s2798_s28  ;;  %s2125_s15 = sadd.s32 4294967294, %s2806_s30  }
  0x19   : > { %3514 = sst [smem:[#allocation26_spill]] %s2802_s29  ;;  %p74_p0 = scmp.ne.s32.totalorder %s2790_s26, %s2786_s25 }
  0x1a   : > { %p3483_p1 = scmp.eq.s32.totalorder %s2928_s14, 0  ;;  %p354_p3 = scmp.eq.s32.totalorder %s2125_s15, 1 }
  0x1b   : > { %p2126_p5 = scmp.ge.s32.totalorder %s2806_s30, 1  ;;  %p389_p7 = scmp.lt.s32.totalorder %s2806_s30, 3 }
  0x1c   : > { %p2937_p4 = por %p3483_p1, %p74_p0  ;;  %p2942_p6 = por %p354_p3, %p74_p0 }
  0x1d   : > { %p2947_p8 = pnand %p2126_p5, %p389_p7  ;;  %s2808_s19 = smov [#allocation10]  }
  0x1e   : > { %s3515_s16 = scalar_select %p2937_p4, 1, 0 }
  0x1f   : > { %s3516_s17 = scalar_select %p2942_p6, 1, 0 }
  0x20   : > { %s3518_s18 = scalar_select %p2947_p8, 1, 0 }
  0x21   : > { %3517 = sst [smem:[#allocation27_spill]] %s3516_s17  ;;  %s401_s20 = sshll.u32 %s2808_s19, 4  ;;  %s2951_s20 = int_to_ptr.vmem [resolvable:$true] %s401_s20 }
  0x22   : > { %p2357_p9 = pneg %p2947_p8  ;;  %s2809_s22 = smov [#allocation11]  }
  0x23   : > { %s417_s23 = sshll.u32 %s2809_s22, 4  ;;  %s3520_s4 = sld [smem:[#allocation33_spill]]  ;;  %s2962_s23 = int_to_ptr.vmem [resolvable:$true] %s417_s23 }
  0x24   : > { %p2958_p11 = pnand %p2357_p9, %p3483_p1 }
  0x26   : > { %s3519_s21 = scalar_select %p2958_p11, 1, 0 }
  0x27   : > { %p2972_p13 = pneg %p2958_p11 }
  0x29   : > { %s2472_s17 = scalar_lea.hbm %s3520_s4, 512 }
  0x2a   : > { %p2473_p12 = scmp.ne.s32.totalorder %s3520_s4, %s2472_s17  ;;  %p2479_p5 = scmp.lt.u32.totalorder %s2472_s17, %s3520_s4 }
  0x2b   : > { %s3521_s12 = scalar_select %p2972_p13, 1, 0 }
  0x2c   : > { %p2475_p0 = pnand %p2972_p13, %p2473_p12 }
  0x2e   : > { %p2476_p3 = pneg %p2475_p0 }
  0x30   : > { %p2481_p7 = pnand %p2479_p5, %p2476_p3 }
  0x32   : > { %2484 = shalt.err (!%p2481_p7)
}
  0x33   : > { %s2485_s25 = scalar_lea.vmem %s2951_s20, 512  ;;  %p2493_p2 = scmp.lt.s32.totalorder %s2951_s20, %s2951_s20 }
  0x34   : > { %p2486_p9 = scmp.ne.s32.totalorder %s2951_s20, %s2485_s25  ;;  %p2494_p6 = scmp.lt.s32.totalorder %s2485_s25, %s2485_s25 }
  0x36   : > { %p2488_p10 = pnand %p2486_p9, %p2972_p13  ;;  %p2495_p12 = por %p2494_p6, %p2493_p2 }
  0x38   : > { %p2489_p1 = pneg %p2488_p10 }
  0x3a   : > { %p2496_p0 = pnand %p2495_p12, %p2489_p1 }
  0x3c   : > { %2499 = shalt.err (!%p2496_p0)
}
  0x3d   : > { %s3487_s24 = smov 128   ;;  %s3488_s11 = smov 8  }
  0x3e   : > { %2360 = dma.hbm_to_vmem [thread:$0]  (!%p2958_p11), %s3520_s4, 512, %s2951_s20, [#allocation9], %s3487_s24, %s3487_s24, %s3488_s11  }
  0x3f   : > { %s3522_s6 = sld [smem:[#allocation34_spill]] }
  0x45   : > { %s2500_s25 = scalar_lea.hbm %s3522_s6, 512 }
  0x46   : > { %p2501_p1 = scmp.ne.s32.totalorder %s3522_s6, %s2500_s25  ;;  %p2507_p10 = scmp.lt.u32.totalorder %s2500_s25, %s3522_s6 }
  0x48   : > { %p2503_p2 = pnand %p2501_p1, %p2972_p13 }
  0x4a   : > { %p2504_p6 = pneg %p2503_p2 }
  0x4c   : > { %p2509_p3 = pnand %p2507_p10, %p2504_p6 }
  0x4e   : > { %2512 = shalt.err (!%p2509_p3)
}
  0x4f   : > { %s2513_s20 = scalar_lea.vmem %s2962_s23, 512  ;;  %p2521_p12 = scmp.lt.s32.totalorder %s2962_s23, %s2962_s23 }
  0x50   : > { %p2514_p5 = scmp.ne.s32.totalorder %s2962_s23, %s2513_s20  ;;  %p2522_p0 = scmp.lt.s32.totalorder %s2513_s20, %s2513_s20 }
  0x52   : > { %p2516_p7 = pnand %p2514_p5, %p2972_p13  ;;  %p2523_p1 = por %p2522_p0, %p2521_p12 }
  0x54   : > { %p2517_p9 = pneg %p2516_p7 }
  0x56   : > { %p2524_p2 = pnand %p2523_p1, %p2517_p9 }
  0x58   : > { %2527 = shalt.err (!%p2524_p2)
}
  0x59   : > { %2363 = dma.hbm_to_vmem [thread:$0]  (!%p2958_p11), %s3522_s6, 512, %s2962_s23, [#allocation12], %s3487_s24, %s3487_s24, %s3488_s11  }
  0x5a   : > { %s52_s13 = sadd.s32 1, %s2802_s29  ;;  %s61_s28 = sadd.s32 1, %s2794_s27 }
  0x5b   : > { %p54_p6 = scmp.ge.s32.totalorder %s52_s13, 2  ;;  %p68_p10 = scmp.ne.s32.totalorder %s2794_s27, %s2790_s26 }
  0x5c   : > { %p69_p3 = scmp.eq.s32.totalorder %s2806_s30, 0  ;;  %p2390_p5 = scmp.lt.s32.totalorder %s2806_s30, 2 }
  0x5d   : > { %s3567_s13 = smov (%p54_p6, %s52_s13), 0  ;;  %p3524_p9 = scmp.eq.s32.totalorder %s2928_s14, 1 }
  0x5e   : > { %3523 = sst [smem:[#allocation28_spill]] %s3567_s13  ;;  %p70_p7 = por %p69_p3, %p68_p10 }
  0x5f   : > { %p3032_p12 = por %p3524_p9, %p68_p10  ;;  %s56_s15 = ssub.s32 %s2802_s29, %s3567_s13 }
  0x60   : > { %s3489_s23 = sand.u32 1, %s2794_s27   ;;  %p59_p0 = scmp.eq.s32.totalorder %s56_s15, 0 }
  0x61   : > { %s3525_s17 = scalar_select %p3032_p12, 1, 0 }
  0x62   : > { %s3041_s19 = sshll.u32 %s3489_s23, 3  ;;  %s3044_s22 = sshll.u32 %s2802_s29, 7 }
  0x63   : > { %3526 = sst [smem:[#allocation29_spill]] %s3525_s17  ;;  %p3046_p1 = pnand %p2390_p5, %p70_p7 }
  0x64   : > { %s3051_s20 = scalar_select %p59_p0, %s2794_s27, %s61_s28  }
  0x65   : > { %s3527_s25 = scalar_select %p3046_p1, 1, 0 }
  0x66   : > { %3528 = sst [smem:[#allocation30_spill]] %s3051_s20  ;;  %s3494_s9 = sand.u32 1, %s2806_s30  }
  0x67   : > { %s3529_s1 = sld [smem:[#allocation32_spill]]  ;;  %s479_s15 = scalar_lea.vmem [#allocation5], %s3041_s19 }
  0x68   : > { %s486_s23 = sshll.u32 %s479_s15, 4  ;;  %s3065_s4 = scalar_lea.sflag [#allocation6], %s3494_s9  ;;  %s3061_s23 = int_to_ptr.vmem [resolvable:$true] %s486_s23 }
  0x69   : > { %p3071_p6 = pneg %p3046_p1 }
  0x6d   : > { %s3058_s11 = scalar_lea.hbm %s3529_s1, %s3044_s22  ;;  %s2533_s15 = scalar_lea.hbm %s3529_s1, 256 }
  0x6e   : > { %s2528_s6 = scalar_lea.hbm %s3058_s11, 128  ;;  %p2534_p5 = scmp.lt.u32.totalorder %s3058_s11, %s3529_s1 }
  0x6f   : > { %p2529_p2 = scmp.ne.s32.totalorder %s3058_s11, %s2528_s6  ;;  %p2535_p7 = scmp.lt.u32.totalorder %s2533_s15, %s2528_s6 }
  0x70   : > { %p2537_p0 = scmp.lt.u32.totalorder %s2528_s6, %s3058_s11 }
  0x71   : > { %p2531_p10 = pnand %p3071_p6, %p2529_p2  ;;  %p2536_p9 = por %p2535_p7, %p2534_p5 }
  0x73   : > { %p2532_p3 = pneg %p2531_p10  ;;  %p2538_p12 = por %p2537_p0, %p2536_p9 }
  0x75   : > { %p2539_p4 = pnand %p2538_p12, %p2532_p3 }
  0x77   : > { %2542 = shalt.err (!%p2539_p4)
}
  0x78   : > { %s2543_s9 = scalar_lea.vmem %s3061_s23, 128  ;;  %s2812_s24 = smov [#allocation5]  }
  0x79   : > { %p2544_p2 = scmp.ne.s32.totalorder %s3061_s23, %s2543_s9  ;;  %s2548_s10 = sshll.u32 %s2812_s24, 4  ;;  %s2549_s10 = int_to_ptr.vmem [resolvable:$false] %s2548_s10 }
  0x7a   : > { %s2550_s29 = scalar_lea.vmem %s2549_s10, 256  ;;  %p2551_p11 = scmp.lt.s32.totalorder %s3061_s23, %s2549_s10 }
  0x7b   : > { %p2546_p10 = pnand %p2544_p2, %p3071_p6  ;;  %p2552_p13 = scmp.lt.s32.totalorder %s2550_s29, %s2543_s9 }
  0x7d   : > { %p2547_p8 = pneg %p2546_p10  ;;  %p2553_p5 = por %p2552_p13, %p2551_p11 }
  0x7f   : > { %p2554_p7 = pnand %p2553_p5, %p2547_p8 }
  0x81   : > { %2557 = shalt.err (!%p2554_p7)
}
  0x82   : > { %2373 = dma.hbm_to_vmem [thread:$0]  (!%p3046_p1), %s3058_s11, 128, %s3061_s23, %s3065_s4  }
  0x83   : > { %s2813_s6 = smov [#allocation13]   ;;  %s3531_s0 = sld [smem:[#allocation31_spill]] }
  0x84   : > { %s433_s13 = sshll.u32 %s2813_s6, 4  ;;  %s2558_s29 = scalar_lea.hbm %s3474_s8, 512  ;;  %s434_s13 = int_to_ptr.vmem [resolvable:$true] %s433_s13 }
  0x85   : > { %p2559_p4 = scmp.ne.s32.totalorder %s3474_s8, %s2558_s29  ;;  %p3532_p8 = scmp.ne.s32.totalorder %s3521_s12, 0 }
  0x86   : > { %p2565_p12 = scmp.lt.u32.totalorder %s2558_s29, %s3474_s8 }
  0x87   : > { %p2561_p11 = pnand %p2559_p4, %p3532_p8 }
  0x89   : > { %s3099_s1 = scalar_lea.hbm %s3531_s0, %s3044_s22  ;;  %p2562_p13 = pneg %p2561_p11 }
  0x8b   : > { %p2567_p3 = pnand %p2565_p12, %p2562_p13 }
  0x8d   : > { %2570 = shalt.err (!%p2567_p3)
}
  0x8e   : > { %s2571_s6 = scalar_lea.vmem %s434_s13, 512  ;;  %p2579_p10 = scmp.lt.s32.totalorder %s434_s13, %s434_s13 }
  0x8f   : > { %p2572_p9 = scmp.ne.s32.totalorder %s434_s13, %s2571_s6  ;;  %p2580_p5 = scmp.lt.s32.totalorder %s2571_s6, %s2571_s6 }
  0x91   : > { %p2574_p0 = pnand %p2572_p9, %p3532_p8  ;;  %p2581_p7 = por %p2580_p5, %p2579_p10 }
  0x93   : > { %p2575_p2 = pneg %p2574_p0 }
  0x95   : > { %p2582_p1 = pnand %p2581_p7, %p2575_p2 }
  0x97   : > { %2585 = shalt.err (!%p2582_p1)
}
  0x98   : > { %p3533_p4 = scmp.ne.s32.totalorder %s3519_s21, 0  ;;  %s3534_s17 = smov 8  }
  0x99   : > { %s3535_s20 = smov 128   ;;  %s460_s12 = scalar_lea.vmem [#allocation2], %s3041_s19 }
  0x9a   : > { %2366 = dma.hbm_to_vmem [thread:$0]  (!%p3533_p4), %s3474_s8, 512, %s434_s13, [#allocation12], %s3535_s20, %s3535_s20, %s3534_s17  }
  0x9b   : > { %s468_s9 = sshll.u32 %s460_s12, 4  ;;  %s3129_s29 = scalar_lea.hbm %s3468_s2, %s3044_s22  ;;  %s3123_s9 = int_to_ptr.vmem [resolvable:$true] %s468_s9 }
  0x9c   : > { %s3536_s11 = sand.u32 1, %s2794_s27   ;;  %s2586_s6 = scalar_lea.hbm %s3099_s1, 128 }
  0x9d   : > { %s457_s23 = scalar_lea.sflag [#allocation3], %s3536_s11  ;;  %p2587_p1 = scmp.ne.s32.totalorder %s3099_s1, %s2586_s6 }
  0x9e   : > { %s2591_s13 = scalar_lea.hbm %s3531_s0, 256  ;;  %p2592_p13 = scmp.lt.u32.totalorder %s3099_s1, %s3531_s0 }
  0x9f   : > { %p2589_p8 = pnand %p2587_p1, %p3071_p6  ;;  %p2593_p12 = scmp.lt.u32.totalorder %s2591_s13, %s2586_s6 }
  0xa0   : > { %p2595_p9 = scmp.lt.u32.totalorder %s2586_s6, %s3099_s1 }
  0xa1   : > { %p2590_p11 = pneg %p2589_p8  ;;  %p2594_p3 = por %p2593_p12, %p2592_p13 }
  0xa3   : > { %p2596_p0 = por %p2595_p9, %p2594_p3 }
  0xa5   : > { %p2597_p2 = pnand %p2596_p0, %p2590_p11 }
  0xa7   : > { %2600 = shalt.err (!%p2597_p2)
}
  0xa8   : > { %s2601_s12 = scalar_lea.vmem %s3123_s9, 128  ;;  %s2814_s21 = smov [#allocation2]  }
  0xa9   : > { %p2602_p10 = scmp.ne.s32.totalorder %s3123_s9, %s2601_s12  ;;  %s2606_s10 = sshll.u32 %s2814_s21, 4  ;;  %s2607_s10 = int_to_ptr.vmem [resolvable:$false] %s2606_s10 }
  0xaa   : > { %s2608_s11 = scalar_lea.vmem %s2607_s10, 256  ;;  %p2609_p4 = scmp.lt.s32.totalorder %s3123_s9, %s2607_s10 }
  0xab   : > { %p2604_p5 = pnand %p2602_p10, %p3071_p6  ;;  %p2610_p1 = scmp.lt.s32.totalorder %s2608_s11, %s2601_s12 }
  0xad   : > { %p2605_p7 = pneg %p2604_p5  ;;  %p2611_p8 = por %p2610_p1, %p2609_p4 }
  0xaf   : > { %p2612_p13 = pnand %p2611_p8, %p2605_p7 }
  0xb1   : > { %2615 = shalt.err (!%p2612_p13)
}
  0xb2   : > { %p3537_p11 = scmp.ne.s32.totalorder %s3527_s25, 0  ;;  %s497_s6 = scalar_lea.vmem [#allocation7], %s3041_s19 }
  0xb3   : > { %s504_s15 = sshll.u32 %s497_s6, 4  ;;  %s3159_s17 = scalar_lea.hbm %s3469_s3, %s3044_s22  ;;  %s505_s15 = int_to_ptr.vmem [resolvable:$true] %s504_s15 }
  0xb4   : > { %2370 = dma.hbm_to_vmem [thread:$0]  (!%p3537_p11), %s3099_s1, 128, %s3123_s9, %s457_s23  }
  0xb5   : > { %s2616_s20 = scalar_lea.hbm %s3129_s29, 128  ;;  %s2621_s10 = scalar_lea.hbm %s3468_s2, 256 }
  0xb6   : > { %p2617_p12 = scmp.ne.s32.totalorder %s3129_s29, %s2616_s20  ;;  %p2622_p0 = scmp.lt.u32.totalorder %s3129_s29, %s3468_s2 }
  0xb7   : > { %p2623_p2 = scmp.lt.u32.totalorder %s2621_s10, %s2616_s20  ;;  %p2625_p5 = scmp.lt.u32.totalorder %s2616_s20, %s3129_s29 }
  0xb8   : > { %p2619_p3 = pnand %p2617_p12, %p3071_p6 }
  0xb9   : > { %p2624_p10 = por %p2623_p2, %p2622_p0 }
  0xba   : > { %p2620_p9 = pneg %p2619_p3 }
  0xbb   : > { %p2626_p7 = por %p2625_p5, %p2624_p10 }
  0xbd   : > { %p2627_p4 = pnand %p2626_p7, %p2620_p9 }
  0xbf   : > { %2630 = shalt.err (!%p2627_p4)
}
  0xc0   : > { %s2631_s1 = scalar_lea.vmem %s505_s15, 128  ;;  %s2815_s22 = smov [#allocation7]  }
  0xc1   : > { %p2632_p1 = scmp.ne.s32.totalorder %s505_s15, %s2631_s1  ;;  %s2636_s9 = sshll.u32 %s2815_s22, 4  ;;  %s2637_s9 = int_to_ptr.vmem [resolvable:$false] %s2636_s9 }
  0xc2   : > { %s2638_s23 = scalar_lea.vmem %s2637_s9, 256  ;;  %p2639_p12 = scmp.lt.s32.totalorder %s505_s15, %s2637_s9 }
  0xc3   : > { %p2634_p8 = pnand %p2632_p1, %p3071_p6  ;;  %p2640_p3 = scmp.lt.s32.totalorder %s2638_s23, %s2631_s1 }
  0xc5   : > { %p2635_p13 = pneg %p2634_p8  ;;  %p2641_p11 = por %p2640_p3, %p2639_p12 }
  0xc7   : > { %p2642_p0 = pnand %p2641_p11, %p2635_p13 }
  0xc9   : > { %2645 = shalt.err (!%p2642_p0)
}
  0xca   : > { %p3538_p2 = scmp.ne.s32.totalorder %s3527_s25, 0  ;;  %s515_s0 = scalar_lea.vmem [#allocation8], %s3041_s19 }
  0xcb   : > { %s523_s6 = sshll.u32 %s515_s0, 4  ;;  %s3539_s24 = sand.u32 1, %s2806_s30   ;;  %s524_s6 = int_to_ptr.vmem [resolvable:$true] %s523_s6 }
  0xcc   : > { %2376 = dma.hbm_to_vmem [thread:$0]  (!%p3538_p2), %s3129_s29, 128, %s505_s15, %s3065_s4  }
  0xcd   : > { %s512_s13 = scalar_lea.sflag [#allocation9], %s3539_s24  ;;  %s2646_s20 = scalar_lea.hbm %s3159_s17, 128 }
  0xce   : > { %p2647_p11 = scmp.ne.s32.totalorder %s3159_s17, %s2646_s20  ;;  %s2651_s10 = scalar_lea.hbm %s3469_s3, 256 }
  0xcf   : > { %p2652_p5 = scmp.lt.u32.totalorder %s3159_s17, %s3469_s3  ;;  %p2653_p7 = scmp.lt.u32.totalorder %s2651_s10, %s2646_s20 }
  0xd0   : > { %p2649_p9 = pnand %p2647_p11, %p3071_p6  ;;  %p2655_p1 = scmp.lt.u32.totalorder %s2646_s20, %s3159_s17 }
  0xd1   : > { %p2654_p4 = por %p2653_p7, %p2652_p5 }
  0xd2   : > { %p2650_p10 = pneg %p2649_p9 }
  0xd3   : > { %p2656_p8 = por %p2655_p1, %p2654_p4 }
  0xd5   : > { %p2657_p13 = pnand %p2656_p8, %p2650_p10 }
  0xd7   : > { %2660 = shalt.err (!%p2657_p13)
}
  0xd8   : > { %s2661_s4 = scalar_lea.vmem %s524_s6, 128  ;;  %s2816_s19 = smov [#allocation8]  }
  0xd9   : > { %p2662_p12 = scmp.ne.s32.totalorder %s524_s6, %s2661_s4  ;;  %s2666_s29 = sshll.u32 %s2816_s19, 4  ;;  %s2667_s29 = int_to_ptr.vmem [resolvable:$false] %s2666_s29 }
  0xda   : > { %s2668_s15 = scalar_lea.vmem %s2667_s29, 256  ;;  %p2669_p11 = scmp.lt.s32.totalorder %s524_s6, %s2667_s29 }
  0xdb   : > { %p2664_p3 = pnand %p2662_p12, %p3071_p6  ;;  %p2670_p9 = scmp.lt.s32.totalorder %s2668_s15, %s2661_s4 }
  0xdd   : > { %p2665_p0 = pneg %p2664_p3  ;;  %p2671_p2 = por %p2670_p9, %p2669_p11 }
  0xdf   : > { %p2672_p5 = pnand %p2671_p2, %p2665_p0 }
  0xe1   : > { %2675 = shalt.err (!%p2672_p5)
}
  0xe2   : > { %p3540_p7 = scmp.ne.s32.totalorder %s3527_s25, 0  ;;  %p3541_p10 = scmp.ne.s32.totalorder %s3518_s18, 0 }
  0xe3   : > { %s3202_s28 = sand.u32 (!%p3541_p10), 1, %s2790_s26   ;;  %p3542_p6 = scmp.ne.s32.totalorder (!%p3541_p10), %s3515_s16, 0 }
  0xe4   : > { %2379 = dma.hbm_to_vmem [thread:$0]  (!%p3540_p7), %s3159_s17, 128, %s524_s6, %s512_s13  }
  0xe5   : > { %532 = sbr.rel (%p3541_p10) target bundleno = 2843 (0xb1b), region = 68  ;;  %s3205_s22 = sshll.u32 (!%p3541_p10), %s3202_s28, 3 }
  0xe6   : > { %s535_s9 = scalar_lea.sflag (!%p3541_p10), [#allocation3], %s3202_s28  ;;  %s538_s23 = scalar_lea.vmem (!%p3541_p10), [#allocation2], %s3205_s22 }
  0xec   : > { %2757 = dma.done.wait (%p3542_p6), %s535_s9, 128  }
  0xed   : > { %2759 = vsyncadd (%p3542_p6), %s535_s9, 4294967168  ;;  %s543_s18 = sand.u32 1, %s2928_s14   ;;  %s547_s17 = scalar_lea.vmem [#allocation5], %s3205_s22 }
  0xee   : > { %s544_s25 = scalar_lea.sflag [#allocation6], %s543_s18 }
  0xef   : > { %2761 = dma.done.wait (%p3542_p6), %s544_s25, 256  }
  0xf0   : > { %2763 = vsyncadd (%p3542_p6), %s544_s25, 4294967040  ;;  %s556_s0 = scalar_lea.vmem [#allocation7], %s3205_s22  ;;  %s562_s6 = scalar_lea.sflag [#allocation9], %s543_s18 }
  0xf1   : > { %s565_s24 = scalar_lea.vmem [#allocation8], %s3205_s22 }
  0xf2   : > { %2765 = dma.done.wait (%p3542_p6), %s562_s6, 128  }
  0xf3   : > { %2767 = vsyncadd (%p3542_p6), %s562_s6, 4294967168  ;;  %p3543_p2 = scmp.eq.s32.totalorder %s2928_s14, 0 }
  0xf5   : > { %2769 = dma.done.wait (%p3543_p2), [#allocation9], 512   ;;  %p3544_p4 = pmov %p3543_p2 }
  0xf6   : > { %p3545_p1 = pmov %p3543_p2 }
  0xf7   : > { %2771 = vsyncadd (%p3544_p4), [#allocation9], 4294966784 }
  0xf8   : > { %2773 = dma.done.wait (%p3545_p1), [#allocation12], 1024   ;;  %p3546_p8 = pmov %p3545_p1 }
  0xf9   : > { %v2817_v0 = vmov 0.0|0.0   ;;  %vm2818_vm0 = vmmov 0   ;;  %v2819_v1 = vmov 0.0   ;;  %v728_v2 = vld [vmem:[#allocation11] sm:$0xff]  ;;  %v729_v3 = vld [vmem:[#allocation11 + $0x8] sm:$0xff]  ;;  %v730_v7 = vld [vmem:[#allocation11 + $0x10] sm:$0xff] }
  0xfa   : > { %2775 = vsyncadd (%p3546_p8), [#allocation12], 4294966272  ;;  %2321 = vmatprep.subr.bf16.mxu1 %v2817_v0  ;;  %2315 = vmatprep.subr.bf16.mxu0 %v2817_v0  ;;  %v643_v4 = vld [vmem:[#allocation10] sm:$0xff]  ;;  %v2322_v5 = vpack.c.bf16 %v729_v3, %v728_v2  ;;  %v644_v6 = vld [vmem:[#allocation10 + $0x8] sm:$0xff]  ;;  %vm654_vm1 = vcmask 261120   ;;  %vm898_vm2 = vcmask 64512  }
  0xfb   : > { %2241 = vmatprep.mubr.msk.f32.mxu1 %vm2818_vm0, %v2819_v1  ;;  %2230 = vmatprep.mubr.msk.f32.mxu0 %vm2818_vm0, %v2819_v1  ;;  %v731_v8 = vld [vmem:[#allocation11 + $0x18] sm:$0xff]  ;;  %v2316_v9 = vpack.c.bf16 %v644_v6, %v643_v4  ;;  %v645_v10 = vld [vmem:[#allocation10 + $0x10] sm:$0xff]  ;;  %v3241_v15 = vld [vmem:[%s538_s23] sm:$0xff]  ;;  %s2820_s12 = smov 120   ;;  %s3547_s11 = sld [smem:[#allocation35_spill]] }
  0xfc   : > { %v646_v11 = vld [vmem:[#allocation10 + $0x18] sm:$0xff]  ;;  %2323 = vmatpush3.bf16.msra.mxu1 %v2322_v5  ;;  %v2325_v12 = vpack.c.bf16 %v731_v8, %v730_v7  ;;  %v812_v16 = vld [vmem:[#allocation13] sm:$0xff]  ;;  %v813_v17 = vld [vmem:[#allocation13 + $0x8] sm:$0xff]  ;;  %s2821_s1 = smov 112   ;;  %s2822_s4 = smov 104  }
  0xfd   : > { %2317 = vmatpush3.bf16.msra.mxu0 %v2316_v9  ;;  %2324 = vmatprep.subr.bf16.mxu1 %v2817_v0  ;;  %v2319_v13 = vpack.c.bf16 %v646_v11, %v645_v10  ;;  %v641_v14 = vld [vmem:[%s547_s17] sm:$0xff]  ;;  %v2328_v19 = vpack.c.bf16 %v813_v17, %v812_v16  ;;  %v642_v22 = vld [vmem:[%s556_s0] sm:$0xff]  ;;  %s2148_s19 = sshll.u32 %s3202_s28, 5  ;;  %s3548_s23 = sld [smem:[#allocation36_spill]] }
  0xfe   : > { %2318 = vmatprep.subr.bf16.mxu0 %v2817_v0  ;;  %v814_v18 = vld [vmem:[#allocation13 + $0x10] sm:$0xff]  ;;  %v815_v20 = vld [vmem:[#allocation13 + $0x18] sm:$0xff]  ;;  %v2151_v23 = vld [vmem:[%s3473_s7] ss:$0 sm:$0xff]  ;;  %s3305_s29 = scalar_lea.vmem [#allocation15], %s2148_s19  ;;  %s3549_s14 = sld [smem:[#allocation25_spill]] }
  0xff   : > { %v2331_v21 = vpack.c.bf16 %v815_v20, %v814_v18  ;;  %v2149_v24 = vld [vmem:[%s3471_s5] ss:$0 sm:$0xff]  ;;  %v3288_v37 = vld [vmem:[%s565_s24] sm:$0xff]  ;;  %s3550_s16 = sld [smem:[#allocation29_spill]]  ;;  %s1912_s20 = sshll.u32 %s3305_s29, 4  ;;  %s3381_s20 = int_to_ptr.vmem [resolvable:$true] %s1912_s20 }
 0x100   : > { %2326 = vmatpush3.bf16.msra.mxu1 %v2325_v12  ;;  %vm897_vm3 = vcmp.eq.s32.totalorder %v3288_v37, 0  ;;  %s3551_s10 = sld [smem:[#allocation39_spill]]  ;;  %s2823_s19 = smov [#allocation15]  }
 0x101   : > { %2320 = vmatpush3.bf16.msra.mxu0 %v2319_v13  ;;  %2255 = vmatprep.subr.mxu1 %v2819_v1  ;;  %v2153_v33 = vld [vmem:[%s3547_s11] ss:$0 sm:$0xff]  ;;  %s2680_s15 = sshll.u32 %s2823_s19, 4  ;;  %s2681_s15 = int_to_ptr.vmem [resolvable:$false] %s2680_s15 }
 0x102   : > { %2327 = vmatprep.subr.bf16.mxu0 %v2817_v0  ;;  %p2683_p11 = scmp.lt.s32.totalorder %s3381_s20, %s2681_s15 }
 0x103   : > { %2242 = vmatmul.mubr.msk.f32.vlgmr.msra.gmra.mrb[0].mxu1 %vm654_vm1, %v641_v14  ;;  %v1233_v61 = vld [vmem:[%s3548_s23 + $0x8] sm:$0xff]  ;;  %v1062_v3 = vld [vmem:[%s3548_s23] sm:$0xff] }
 0x104   : > { %2231 = vmatmul.mubr.msk.f32.vlgmr.msra.gmra.mrb[0].mxu0 %vm654_vm1, %v3241_v15  ;;  %2257 = vmatprep.mubr.msk.f32.mxu1 %vm2818_vm0, %v2819_v1  ;;  %s2182_s13 = sshll.u32 %s3549_s14, 9 }
 0x105   : > { %2252 = vmatprep.mubr.msk.f32.mxu0 %vm2818_vm0, %v2819_v1  ;;  %2329 = vmatpush3.bf16.msra.mxu0 %v2328_v19  ;;  %p3552_p12 = scmp.ne.s32.totalorder %s3550_s16, 0 }
 0x106   : > { %2330 = vmatprep.subr.bf16.mxu0 %v2817_v0  ;;  %s3379_s11 = scalar_lea.hbm %s3551_s10, %s2182_s13 }
 0x109   : > { %2332 = vmatpush3.bf16.msra.mxu0 %v2331_v21 }
 0x10a   : > { %2265 = vmatprep.subr.mxu0 %v2819_v1 }
 0x10c   : > { %2253 = vmatmul.mubr.msk.f32.vlgmr.msra.gmra.mrb[2].mxu0 %vm654_vm1, %v642_v22 }
 0x10d   : > { %2267 = vmatprep.mubr.msk.f32.mxu0 %vm2818_vm0, %v2819_v1 }
 0x1d6   : > { %v808_v25 = vpop.f32.mrb[0].mxu1 }
 0x1d7   : > { %v809_v26 = vadd.f32 %v2151_v23, %v808_v25  ;;  %v2243_v27 = vpop.f32.mrb[1].mxu1  ;;  %v724_v28 = vpop.f32.mrb[0].mxu0 }
 0x1d8   : > { %v3263_v29 = vadd.f32 %v2149_v24, %v724_v28  ;;  %v2232_v30 = vpop.f32.mrb[1].mxu0 }
 0x1d9   : > { %1065 = vrot.lane.b32.xlu0 %v809_v26, %s2820_s12  ;;  %2256 = vmatpush3.xpose.msk.msra.mxu1 %vm898_vm2, %v809_v26 }
 0x1da   : > { %2260 = vmatprep.subr.mxu1 %v2819_v1 }
 0x1dc   : > { %2258 = vmatmul.mubr.msk.f32.vlgmr.msra.gmra.mrb[2].mxu1 %vm898_vm2, %v3263_v29 }
 0x1dd   : > { %1063 = vrot.lane.b32.xlu0 %v3263_v29, %s2820_s12  ;;  %2262 = vmatprep.mubr.msk.f32.mxu1 %vm2818_vm0, %v2819_v1 }
 0x1df   : > { %v892_v34 = vpop.f32.mrb[2].mxu0 }
 0x1e0   : > { %v3282_v35 = vadd.f32 %v2153_v33, %v892_v34  ;;  %v2254_v36 = vpop.f32.mrb[3].mxu0 }
 0x1e2   : > { %2261 = vmatpush3.msra.mxu1 %v3282_v35 }
 0x1e3   : > { %2270 = vmatprep.subr.mxu1 %v2819_v1 }
 0x24b   : > { %v1066_v31 = vpop.permute.xlu0 %1065 }
 0x24c   : > { %2266 = vmatpush3.xpose.msk.msra.mxu0 %vm898_vm2, %v1066_v31 }
 0x24d   : > { %2275 = vmatprep.subr.mxu0 %v2819_v1 }
 0x24f   : > { %v1064_v32 = vpop.permute.xlu0 %1063 }
 0x250   : > { %2268 = vmatmul.mubr.msk.f32.vlgmr.msra.gmra.mrb[4].mxu0 %vm898_vm2, %v1064_v32 }
 0x251   : > { %2277 = vmatprep.mubr.msk.f32.mxu0 %vm2818_vm0, %v2819_v1  ;;  %2276 = vmatpush3.msra.mxu0 %v1233_v61 }
 0x252   : > { %2285 = vmatprep.subr.mxu0 %v2819_v1 }
 0x2af   : > { %v971_v38 = vpop.f32.mrb[2].mxu1 }
 0x2b0   : > { %v975_v39 = vmul.f32 0.35355338, %v971_v38  ;;  %v2259_v40 = vpop.f32.mrb[3].mxu1 }
 0x2b2   : > { %v976_v41 = vsel %vm897_vm3, -1e+09, %v975_v39 }
 0x2b3   : > { %v977_v42 = vsel %vm898_vm2, %v976_v41, -inf }
 0x2b4   : > { %978 = vmax.xlane.f32.xlu1 %v977_v42 }
 0x323   : > { %v1137_v43 = vpop.f32.mrb[4].mxu0 }
 0x324   : > { %v1141_v44 = vmul.f32 0.35355338, %v1137_v43  ;;  %v2269_v45 = vpop.f32.mrb[5].mxu0 }
 0x326   : > { %v1142_v46 = vsel %vm897_vm3, -1e+09, %v1141_v44 }
 0x327   : > { %v1143_v47 = vsel %vm898_vm2, %v1142_v46, -inf }
 0x328   : > { %1144 = vmax.xlane.f32.xlu1 %v1143_v47 }
 0x341   : > { %v979_v48 = vpop.xlane.xlu1 %978 }
 0x342   : > { %v980_v49 = vsub.f32 %v976_v41, %v979_v48 }
 0x344   : > { %v981_v50 = vmul.f32 1.442695, %v980_v49 }
 0x346   : > { %2456 = vpow2.f32 %v981_v50 }
 0x350   : > { %v2457_v51 = vpop.eup %2456 }
 0x351   : > { %v983_v52 = vsel %vm898_vm2, %v2457_v51, 0.0 }
 0x352   : > { %984 = vadd.xlane.f32.xlu0 %v983_v52 }
 0x368   : > { %1473 = vrot.lane.b32.xlu0 %v3282_v35, %s2821_s1 }
 0x36c   : > { %1626 = vrot.lane.b32.xlu0 %v809_v26, %s2822_s4 }
 0x3b5   : > { %v1145_v53 = vpop.xlane.xlu1 %1144 }
 0x3b6   : > { %v1146_v54 = vsub.f32 %v1142_v46, %v1145_v53 }
 0x3b8   : > { %v1147_v55 = vmul.f32 1.442695, %v1146_v54 }
 0x3ba   : > { %2458 = vpow2.f32 %v1147_v55 }
 0x3c4   : > { %v2459_v56 = vpop.eup %2458 }
 0x3c5   : > { %v1149_v57 = vsel %vm898_vm2, %v2459_v56, 0.0 }
 0x3c6   : > { %1150 = vadd.xlane.f32.xlu1 %v1149_v57 }
 0x3d7   : > { %1157 = vrot.lane.b32.xlu1 %v3282_v35, %s2820_s12 }
 0x3db   : > { %1382 = vrot.lane.b32.xlu1 %v809_v26, %s2821_s1 }
 0x3df   : > { %v985_v58 = vpop.xlane.xlu0 %984  ;;  %1380 = vrot.lane.b32.xlu1 %v3263_v29, %s2821_s1  ;;  %s1884_s1 = scalar_lea.sflag [#allocation16], %s3202_s28 }
 0x3e0   : > { %2460 = vrcp.f32 %v985_v58 }
 0x3e3   : > { %v1474_v5 = vpop.permute.xlu0 %1473 }
 0x3e7   : > { %v1627_v27 = vpop.permute.xlu0 %1626 }
 0x3ea   : > { %v2461_v59 = vpop.eup %2460 }
 0x3eb   : > { %v987_v60 = vmul.f32 %v2461_v59, %v2457_v51 }
 0x3ed   : > { %988 = vst.msk [vmem:[%s3305_s29] sm:$0xff] %vm898_vm2, %v987_v60  ;;  %2263 = vmatmul.mubr.msk.f32.vlgmr.msra.gmra.mrb[4].mxu1 %vm898_vm2, %v987_v60 }
 0x3ee   : > { %2272 = vmatprep.mubr.msk.f32.mxu1 %vm2818_vm0, %v2819_v1 }
 0x453   : > { %v1151_v62 = vpop.xlane.xlu1 %1150 }
 0x454   : > { %2462 = vrcp.f32 %v1151_v62 }
 0x457   : > { %v1158_v63 = vpop.permute.xlu1 %1157 }
 0x458   : > { %2271 = vmatpush3.msra.mxu1 %v1158_v63 }
 0x459   : > { %2280 = vmatprep.subr.mxu1 %v2819_v1 }
 0x45b   : > { %v1383_v7 = vpop.permute.xlu1 %1382 }
 0x45e   : > { %v2463_v0 = vpop.eup %2462 }
 0x45f   : > { %v1153_v2 = vmul.f32 %v2463_v0, %v2459_v56  ;;  %v1381_v10 = vpop.permute.xlu1 %1380 }
 0x461   : > { %2160 = vst.msk [vmem:[%s3305_s29 + $0x8] sm:$0xff] %vm898_vm2, %v1153_v2  ;;  %2273 = vmatmul.mubr.msk.f32.vlgmr.msra.gmra.mrb[6].mxu1 %vm898_vm2, %v1153_v2 }
 0x462   : > { %2281 = vmatpush3.msra.mxu1 %v1062_v3  ;;  %2282 = vmatprep.mubr.msk.f32.mxu1 %vm2818_vm0, %v2819_v1 }
 0x463   : > { %2290 = vmatprep.subr.mxu1 %v2819_v1 }
 0x4c0   : > { %v1058_v4 = vpop.f32.mrb[4].mxu1 }
 0x4c1   : > { %v2264_v6 = vpop.f32.mrb[5].mxu1  ;;  %2283 = vmatmul.mubr.msk.f32.vlgmr.msra.gmra.mrb[8].mxu1 %vm898_vm2, %v1058_v4 }
 0x4c2   : > { %2291 = vmatpush3.msra.mxu1 %v1474_v5  ;;  %2292 = vmatprep.mubr.msk.f32.mxu1 %vm2818_vm0, %v2819_v1 }
 0x4c3   : > { %2300 = vmatprep.subr.mxu1 %v2819_v1 }
 0x534   : > { %v1229_v8 = vpop.f32.mrb[6].mxu1 }
 0x535   : > { %v2274_v9 = vpop.f32.mrb[7].mxu1  ;;  %2278 = vmatmul.mubr.msk.f32.vlgmr.msra.gmra.mrb[6].mxu0 %vm898_vm2, %v1229_v8 }
 0x536   : > { %2286 = vmatpush3.xpose.msk.msra.mxu0 %vm898_vm2, %v1383_v7  ;;  %2287 = vmatprep.mubr.msk.f32.mxu0 %vm2818_vm0, %v2819_v1 }
 0x537   : > { %2295 = vmatprep.subr.mxu0 %v2819_v1 }
 0x539   : > { %2288 = vmatmul.mubr.msk.f32.vlgmr.msra.gmra.mrb[8].mxu0 %vm898_vm2, %v1381_v10 }
 0x53a   : > { %2297 = vmatprep.mubr.msk.f32.mxu0 %vm2818_vm0, %v2819_v1 }
 0x594   : > { %v1376_v11 = vpop.f32.mrb[8].mxu1 }
 0x595   : > { %v2284_v12 = vpop.f32.mrb[9].mxu1 }
 0x608   : > { %v1303_v13 = vpop.f32.mrb[6].mxu0 }
 0x609   : > { %v1377_v14 = vadd.f32 %v1376_v11, %v1303_v13  ;;  %v2279_v16 = vpop.f32.mrb[7].mxu0 }
 0x60c   : > { %v1454_v17 = vpop.f32.mrb[8].mxu0 }
 0x60d   : > { %v1458_v18 = vmul.f32 0.35355338, %v1454_v17  ;;  %v2289_v19 = vpop.f32.mrb[9].mxu0 }
 0x60f   : > { %v1459_v20 = vsel %vm897_vm3, -1e+09, %v1458_v18 }
 0x610   : > { %v1460_v21 = vsel %vm898_vm2, %v1459_v20, -inf }
 0x611   : > { %1461 = vmax.xlane.f32.xlu1 %v1460_v21 }
 0x69e   : > { %v1462_v22 = vpop.xlane.xlu1 %1461 }
 0x69f   : > { %v1463_v23 = vsub.f32 %v1459_v20, %v1462_v22 }
 0x6a1   : > { %v1464_v24 = vmul.f32 1.442695, %v1463_v23 }
 0x6a3   : > { %2464 = vpow2.f32 %v1464_v24 }
 0x6ad   : > { %v2465_v25 = vpop.eup %2464 }
 0x6ae   : > { %v1466_v26 = vsel %vm898_vm2, %v2465_v25, 0.0 }
 0x6af   : > { %1467 = vadd.xlane.f32.xlu0 %v1466_v26 }
 0x6c5   : > { %1624 = vrot.lane.b32.xlu0 %v3263_v29, %s2822_s4  ;;  %v1549_v29 = vld [vmem:[%s3548_s23 + $0x10] sm:$0xff] }
 0x6c6   : > { %2296 = vmatpush3.msra.mxu0 %v1549_v29 }
 0x6c7   : > { %2305 = vmatprep.subr.mxu0 %v2819_v1 }
 0x73c   : > { %v1468_v28 = vpop.xlane.xlu0 %1467 }
 0x73d   : > { %2466 = vrcp.f32 %v1468_v28 }
 0x740   : > { %v1625_v32 = vpop.permute.xlu0 %1624 }
 0x747   : > { %v2467_v30 = vpop.eup %2466 }
 0x748   : > { %v1470_v31 = vmul.f32 %v2467_v30, %v2465_v25 }
 0x74a   : > { %2166 = vst.msk [vmem:[%s3305_s29 + $0x10] sm:$0xff] %vm898_vm2, %v1470_v31  ;;  %2293 = vmatmul.mubr.msk.f32.vlgmr.msra.gmra.mrb[10].mxu1 %vm898_vm2, %v1470_v31 }
 0x74b   : > { %2301 = vmatpush3.xpose.msk.msra.mxu1 %vm898_vm2, %v1627_v27  ;;  %2302 = vmatprep.mubr.msk.f32.mxu1 %vm2818_vm0, %v2819_v1 }
 0x74c   : > { %2310 = vmatprep.subr.mxu1 %v2819_v1 }
 0x74e   : > { %2303 = vmatmul.mubr.msk.f32.vlgmr.msra.gmra.mrb[12].mxu1 %vm898_vm2, %v1625_v32 }
 0x74f   : > { %2312 = vmatprep.mubr.msk.f32.mxu1 %vm2818_vm0, %v2819_v1 }
 0x81d   : > { %v1545_v33 = vpop.f32.mrb[10].mxu1 }
 0x81e   : > { %v2294_v34 = vpop.f32.mrb[11].mxu1  ;;  %2298 = vmatmul.mubr.msk.f32.vlgmr.msra.gmra.mrb[10].mxu0 %vm898_vm2, %v1545_v33 }
 0x81f   : > { %2307 = vmatprep.mubr.msk.f32.mxu0 %vm2818_vm0, %v2819_v1  ;;  %v1793_v1 = vld [vmem:[%s3548_s23 + $0x18] sm:$0xff] }
 0x820   : > { %2311 = vmatpush3.msra.mxu1 %v1793_v1 }
 0x821   : > { %v1698_v36 = vpop.f32.mrb[12].mxu1 }
 0x822   : > { %v1702_v38 = vmul.f32 0.35355338, %v1698_v36  ;;  %v2304_v39 = vpop.f32.mrb[13].mxu1 }
 0x824   : > { %v1703_v40 = vsel %vm897_vm3, -1e+09, %v1702_v38 }
 0x825   : > { %v1704_v41 = vsel %vm898_vm2, %v1703_v40, -inf }
 0x826   : > { %1705 = vmax.xlane.f32.xlu0 %v1704_v41 }
 0x8b3   : > { %v1706_v42 = vpop.xlane.xlu0 %1705 }
 0x8b4   : > { %v1707_v43 = vsub.f32 %v1703_v40, %v1706_v42 }
 0x8b6   : > { %v1708_v44 = vmul.f32 1.442695, %v1707_v43 }
 0x8b8   : > { %2468 = vpow2.f32 %v1708_v44 }
 0x8c2   : > { %v2469_v45 = vpop.eup %2468 }
 0x8c3   : > { %v1710_v46 = vsel %vm898_vm2, %v2469_v45, 0.0 }
 0x8c4   : > { %1711 = vadd.xlane.f32.xlu1 %v1710_v46 }
 0x8d5   : > { %1717 = vrot.lane.b32.xlu1 %v3282_v35, %s2822_s4  ;;  %s2676_s4 = scalar_lea.vmem %s3381_s20, 512 }
 0x8d6   : > { %p2677_p13 = scmp.ne.s32.totalorder %s3381_s20, %s2676_s4 }
 0x8d8   : > { %p2678_p3 = pnand %p2677_p13, %p3552_p12 }
 0x8da   : > { %p2679_p0 = pneg %p2678_p3 }
 0x8f1   : > { %v1619_v37 = vpop.f32.mrb[10].mxu0 }
 0x8f2   : > { %v1623_v47 = vadd.f32 %v1619_v37, %v1377_v14  ;;  %v2299_v48 = vpop.f32.mrb[11].mxu0 }
 0x951   : > { %v1712_v49 = vpop.xlane.xlu1 %1711 }
 0x952   : > { %2470 = vrcp.f32 %v1712_v49 }
 0x955   : > { %v1718_v50 = vpop.permute.xlu1 %1717 }
 0x956   : > { %2306 = vmatpush3.msra.mxu0 %v1718_v50 }
 0x95c   : > { %v2471_v51 = vpop.eup %2470 }
 0x95d   : > { %v1714_v52 = vmul.f32 %v2471_v51, %v2469_v45 }
 0x95f   : > { %2171 = vst.msk [vmem:[%s3305_s29 + $0x18] sm:$0xff] %vm898_vm2, %v1714_v52  ;;  %2308 = vmatmul.mubr.msk.f32.vlgmr.msra.gmra.mrb[12].mxu0 %vm898_vm2, %v1714_v52  ;;  %s2682_s29 = scalar_lea.vmem %s2681_s15, 1024 }
 0x960   : > { %p2684_p9 = scmp.lt.s32.totalorder %s2682_s29, %s2676_s4 }
 0x962   : > { %p2685_p5 = por %p2684_p9, %p2683_p11 }
 0x964   : > { %p2686_p7 = pnand %p2685_p5, %p2679_p0 }
 0xa32   : > { %v1789_v35 = vpop.f32.mrb[12].mxu0 }
 0xa33   : > { %v2309_v53 = vpop.f32.mrb[13].mxu0  ;;  %2313 = vmatmul.mubr.msk.f32.vlgmr.msra.gmra.mrb[14].mxu1 %vm898_vm2, %v1789_v35 }
 0xa34   : > { %2689 = shalt.err (!%p2686_p7)
}
 0xa35   : > { %s2690_s9 = scalar_lea.hbm %s3379_s11, 512  ;;  %s2694_s17 = scalar_lea.hbm %s3551_s10, 1024 }
 0xa36   : > { %p2691_p10 = scmp.ne.s32.totalorder %s3379_s11, %s2690_s9  ;;  %p2695_p4 = scmp.lt.u32.totalorder %s3379_s11, %s3551_s10 }
 0xa37   : > { %p2696_p1 = scmp.lt.u32.totalorder %s2694_s17, %s2690_s9  ;;  %p2698_p13 = scmp.lt.u32.totalorder %s2690_s9, %s3379_s11 }
 0xa38   : > { %p2692_p6 = pnand %p2691_p10, %p3552_p12 }
 0xa39   : > { %p2697_p8 = por %p2696_p1, %p2695_p4 }
 0xa3a   : > { %p2693_p2 = pneg %p2692_p6 }
 0xa3b   : > { %p2699_p3 = por %p2698_p13, %p2697_p8 }
 0xa3d   : > { %p2700_p0 = pnand %p2699_p3, %p2693_p2 }
 0xa3f   : > { %2703 = shalt.err (!%p2700_p0)
}
 0xa40   : > { %s2824_s24 = smov 128   ;;  %s2825_s13 = smov 8  }
 0xa41   : > { %2354 = dma.vmem_to_hbm [thread:$0]  (%p3552_p12), %s3381_s20, 512, %s3379_s11, %s1884_s1, %s2824_s24, %s2824_s24, %s2825_s13  }
 0xa42   : > { %s3553_s4 = sld [smem:[#allocation37_spill]]  ;;  %s2177_s19 = sshll.u32 %s3549_s14, 7 }
 0xa43   : > { %s632_s15 = scalar_lea.vmem [#allocation14], %s3205_s22  ;;  %s3554_s25 = sld [smem:[#allocation38_spill]] }
 0xa44   : > { %s1898_s29 = sshll.u32 %s632_s15, 4  ;;  %s1879_s20 = scalar_lea.sflag [#allocation4], %s3202_s28  ;;  %s3418_s29 = int_to_ptr.vmem [resolvable:$true] %s1898_s29 }
 0xa45   : > { %s2704_s11 = scalar_lea.vmem %s3418_s29, 128  ;;  %s2826_s22 = smov [#allocation14]  }
 0xa46   : > { %p2705_p11 = scmp.ne.s32.totalorder %s3418_s29, %s2704_s11  ;;  %s2708_s14 = sshll.u32 %s2826_s22, 4  ;;  %s2709_s14 = int_to_ptr.vmem [resolvable:$false] %s2708_s14 }
 0xa47   : > { %s2710_s1 = scalar_lea.vmem %s2709_s14, 256  ;;  %p2711_p7 = scmp.lt.s32.totalorder %s3418_s29, %s2709_s14 }
 0xa48   : > { %v2174_v55 = vld [vmem:[%s3553_s4] ss:$0 sm:$0xff]  ;;  %p2706_p9 = pnand %p2705_p11, %p3552_p12  ;;  %p2712_p10 = scmp.lt.s32.totalorder %s2710_s1, %s2704_s11 }
 0xa49   : > { %s3555_s17 = smov %s3554_s25  ;;  %s3416_s0 = scalar_lea.hbm %s3554_s25, %s2177_s19 }
 0xa4a   : > { %p2707_p5 = pneg %p2706_p9  ;;  %p2713_p6 = por %p2712_p10, %p2711_p7 }
 0xa4c   : > { %p2714_p2 = pnand %p2713_p6, %p2707_p5 }
 0xb06   : > { %v1863_v54 = vpop.f32.mrb[14].mxu1 }
 0xb07   : > { %v1867_v56 = vadd.f32 %v1863_v54, %v1623_v47  ;;  %v2314_v57 = vpop.f32.mrb[15].mxu1 }
 0xb09   : > { %v1875_v58 = vadd.f32 %v2174_v55, %v1867_v56 }
 0xb0b   : > { %v1876_v59 = vadd.f32 %v1875_v58, %v3241_v15 }
 0xb0d   : > { %1877 = vst.msk [vmem:[%s632_s15] sm:$0xff] %vm654_vm1, %v1876_v59 }
 0xb0e   : > { %2717 = shalt.err (!%p2714_p2)
}
 0xb0f   : > { %s2718_s28 = scalar_lea.hbm %s3416_s0, 128  ;;  %s2722_s13 = scalar_lea.hbm %s3555_s17, 256 }
 0xb10   : > { %p2719_p4 = scmp.ne.s32.totalorder %s3416_s0, %s2718_s28  ;;  %p2723_p13 = scmp.lt.u32.totalorder %s3416_s0, %s3555_s17 }
 0xb11   : > { %p2724_p3 = scmp.lt.u32.totalorder %s2722_s13, %s2718_s28  ;;  %p2726_p11 = scmp.lt.u32.totalorder %s2718_s28, %s3416_s0 }
 0xb12   : > { %p2720_p1 = pnand %p2719_p4, %p3552_p12 }
 0xb13   : > { %p2725_p0 = por %p2724_p3, %p2723_p13 }
 0xb14   : > { %p2721_p8 = pneg %p2720_p1 }
 0xb15   : > { %p2727_p9 = por %p2726_p11, %p2725_p0 }
 0xb17   : > { %p2728_p5 = pnand %p2727_p9, %p2721_p8 }
 0xb19   : > { %2731 = shalt.err (!%p2728_p5)
}
 0xb1a   : > { %2353 = dma.vmem_to_hbm [thread:$0]  (%p3552_p12), %s3418_s29, 128, %s3416_s0, %s1879_s20  }
 0xb1b PF: > { %s3556_s4 = sld [smem:[#allocation24_spill]]  ;;  %s3557_s19 = sld [smem:[#allocation27_spill]] }
 0xb1c   : > { %p3559_p10 = scmp.ge.s32.totalorder %s2806_s30, 2 }
 0xb21   : > { %s1927_s15 = sand.u32 1, %s3556_s4   ;;  %p3558_p7 = scmp.ne.s32.totalorder %s3557_s19, 0 }
 0xb22   : > { %s1928_s9 = scalar_lea.sflag [#allocation4], %s1927_s15 }
 0xb23   : > { %p2381_p6 = pnand %p3559_p10, %p3558_p7 }
 0xb25   : > { %2777 = dma.done.wait (!%p2381_p6), %s1928_s9, 128  }
 0xb26   : > { %2779 = vsyncadd (!%p2381_p6), %s1928_s9, 4294967168  ;;  %s1937_s18 = scalar_lea.sflag [#allocation16], %s1927_s15 }
 0xb27   : > { %2781 = dma.done.wait (!%p2381_p6), %s1937_s18, 512  }
 0xb28   : > { %2783 = vsyncadd (!%p2381_p6), %s1937_s18, 4294966784  ;;  %s40_s30 = sadd.s32 1, %s2806_s30   ;;  %s3560_s16 = sld [smem:[#allocation30_spill]] }
 0xb29   : > { %p37_p2 = scmp.ge.s32.totalorder %s40_s30, 4   ;;  %s3561_s28 = sld [smem:[#allocation26_spill]] }
 0xb2a   : > { %s3562_s29 = sld [smem:[#allocation28_spill]]  ;;  %s3563_s25 = smov %s2790_s26 }
 0xb2b   : > { %s3564_s26 = smov %s2794_s27  ;;  %39 = sbr.rel (!%p37_p2) target bundleno = 23 (0x17), region = 182 }
 0xb2e   : > { %s3565_s27 = smov %s3560_s16 }
 0xb32   :  { %1942 = vsyncpa [#allocation3], 1 }
 0xb33   :  { %1944 = vsyncpa [#allocation3 + $0x1], 1 }
 0xb34   :  { %1945 = vsyncpa [#allocation6], 1 }
 0xb35   :  { %1947 = vsyncpa [#allocation6 + $0x1], 1 }
 0xb36   :  { %1948 = vsyncpa [#allocation9], 1 }
 0xb37   :  { %1950 = vsyncpa [#allocation9 + $0x1], 1 }
 0xb38   :  { %1951 = vsyncpa [#allocation12], 1 }
 0xb39   :  { %1952 = vsyncpa [#allocation4], 1 }
 0xb3a   :  { %1954 = vsyncpa [#allocation4 + $0x1], 1 }
 0xb3b   :  { %1955 = vsyncpa [#allocation16], 1 }
 0xb3c   :  { %1957 = vsyncpa [#allocation16 + $0x1], 1 }

</bundles_post_ra>
